<compile_context>
chip_gen: v7x
topology: tpu7x:2x2x1
jax: 0.10.0
libtpu: 0.0.40
codegen_flags: <defaults>
</compile_context>

<pallas_src>
import jax
import jax.numpy as jnp
from jax.experimental import pallas as pl
from jax.experimental.pallas import tpu as pltpu

N_QUBITS = 4
LEAK = 0.2           # LeakyReLU negative slope
TB_MAX = 1024        # default max lane (batch) tile; sweep 512-2048 per chip


def disc_kernel(x_ref, w1, b1, w2, b2, w3, b3, w4, b4, o_ref):
    """Fused 4-layer MLP in a (features, batch) lane-dense layout.

    x_ref : (4, tb)    input tile, batch on the lane axis
    wN    : (out, in)  PyTorch nn.Linear weight layout
    bN    : (out, 1)
    o_ref : (1, tb)    lane-dense sigmoid output tile
    """

    def lrelu(h):
        return jnp.where(h >= 0, h, LEAK * h)

    x = x_ref[...]          # (4, tb)   f32
    w1v = w1[...]           # (256, 4)  f32

    # Layer 1: D_in == 4 is a degenerate contraction for the MXU -> 4 VPU
    # outer-product FMAs.  x[k:k+1, :] is a cheap single-row (sublane) slice
    # broadcast over the (256, tb) activation.
    h = b1[...] + w1v[:, 0:1] * x[0:1, :]           # (256, tb)
    for k in range(1, x.shape[0]):                  # static unroll, D_in == 4
        h = h + w1v[:, k:k + 1] * x[k:k + 1, :]
    h = lrelu(h)
    # TODO(synk): nn.Dropout(0.3) is identity in eval/inference mode; training-mode
    # stochastic dropout (pltpu.prng_seed / prng_random_bits mask) not implemented.

    # Layers 2-4: f32 MXU matmuls W(out,in) @ h(in,tb), f32 accumulation.
    h = lrelu(jnp.dot(w2[...], h, preferred_element_type=jnp.float32) + b2[...])   # (128, tb)
    h = lrelu(jnp.dot(w3[...], h, preferred_element_type=jnp.float32) + b3[...])   # (64, tb)
    z = jnp.dot(w4[...], h, preferred_element_type=jnp.float32) + b4[...]          # (1, tb)

    # Lane-dense (1, tb) store: unmasked vst, no skinny 1-lane writeback.
    o_ref[...] = jax.nn.sigmoid(z)


def _pick_tile(B, tb_max=TB_MAX):
    """Lane tile: multiple of 128, as large as possible, but keep >= 2 grid
    steps when the batch allows it so the 'parallel' axis can span both
    TensorCores on v7x."""
    half = -(-B // 2)                    # ceil(B / 2)
    half = -(-half // 128) * 128         # round up to lane width
    return int(max(128, min(tb_max, half)))


def discriminator_forward(x, params, *, tb=None):
    """x: (B, D_in) f32; params: list of (W (out,in), b (out,1)) as in PyTorch.

    Returns sigmoid(model(x)) of shape (B, 1), eval-mode (dropout = identity).
    """
    B, d_in = x.shape
    if tb is None:
        tb = _pick_tile(B)
    assert tb % 128 == 0, "lane tile must be a multiple of 128"

    (w1, b1), (w2, b2), (w3, b3), (w4, b4) = params

    n_tiles = pl.cdiv(B, tb)
    B_pad = n_tiles * tb

    # Batch -> lane axis: (B, 4) -> (4, B); tail-pad only up to the tile edge.
    xt = x.T
    if B_pad != B:
        xt = jnp.pad(xt, ((0, 0), (0, B_pad - B)))

    def param_spec(shape):
        # Constant index_map: parameter block DMA'd once, VMEM-resident for
        # every grid step (no per-step re-fetch).
        return pl.BlockSpec(shape, lambda i: (0, 0))

    out = pl.pallas_call(
        disc_kernel,
        out_shape=jax.ShapeDtypeStruct((1, B_pad), jnp.float32),
        grid=(n_tiles,),
        in_specs=[
            pl.BlockSpec((d_in, tb), lambda i: (0, i)),     # x tile, lane-dense
            param_spec(w1.shape), param_spec(b1.shape),
            param_spec(w2.shape), param_spec(b2.shape),
            param_spec(w3.shape), param_spec(b3.shape),
            param_spec(w4.shape), param_spec(b4.shape),
        ],
        out_specs=pl.BlockSpec((1, tb), lambda i: (0, i)),  # lane-dense output
        compiler_params=pltpu.CompilerParams(
            dimension_semantics=("parallel",)),             # shard steps across TCs
    )(xt, w1, b1, w2, b2, w3, b3, w4, b4)

    return out[0, :B].reshape(B, 1)


def init_params(key, dims=(N_QUBITS, 256, 128, 64, 1)):
    """Xavier-uniform weights in PyTorch (out,in) layout, constant-0.01 biases (out,1)."""
    params = []
    for i in range(len(dims) - 1):
        key, sub = jax.random.split(key)
        fan_in, fan_out = dims[i], dims[i + 1]
        bound = (6.0 / (fan_in + fan_out)) ** 0.5
        w = jax.random.uniform(sub, (fan_out, fan_in), jnp.float32, -bound, bound)
        b = jnp.full((fan_out, 1), 0.01, jnp.float32)
        params.append((w, b))
    return params


def reference_forward(x, params):
    """Plain-JAX f32 reference (eval mode: dropout = identity)."""
    h = x
    for idx, (w, b) in enumerate(params):
        h = h @ w.T + b.T
        if idx < 3:
            h = jnp.where(h >= 0, h, LEAK * h)
    return jax.nn.sigmoid(h)


if __name__ == "__main__":
    key = jax.random.PRNGKey(0)
    k_param, k_x = jax.random.split(key)
    params = init_params(k_param)

    # Small ragged batch (not a multiple of the lane tile) -> exercises the
    # tail-padded tile and the wrapper slice.
    B = 40
    x = jax.random.normal(k_x, (B, N_QUBITS), dtype=jnp.float32)
    out = jax.block_until_ready(discriminator_forward(x, params))
    ref = reference_forward(x, params)
    assert out.shape == (B, 1), out.shape
    assert jnp.allclose(out, ref, atol=1e-3, rtol=1e-3), \
        float(jnp.max(jnp.abs(out - ref)))

    # Larger batch -> multi-step "parallel" grid (2 tiles of 128).
    B2 = 256
    x2 = jax.random.normal(jax.random.PRNGKey(1), (B2, N_QUBITS), dtype=jnp.float32)
    out2 = jax.block_until_ready(discriminator_forward(x2, params))
    ref2 = reference_forward(x2, params)
    assert out2.shape == (B2, 1), out2.shape
    assert jnp.allclose(out2, ref2, atol=1e-3, rtol=1e-3), \
        float(jnp.max(jnp.abs(out2 - ref2)))

    print("KERNEL_OK")
</pallas_src>

<mosaic_0001>
module attributes {stable_mosaic.version = 11 : i64} {
  func.func @disc_kernel(%arg0: i32, %arg1: memref<4x128xf32, #tpu.memory_space<vmem>>, %arg2: memref<256x4xf32, #tpu.memory_space<vmem>>, %arg3: memref<256x1xf32, #tpu.memory_space<vmem>>, %arg4: memref<128x256xf32, #tpu.memory_space<vmem>>, %arg5: memref<128x1xf32, #tpu.memory_space<vmem>>, %arg6: memref<64x128xf32, #tpu.memory_space<vmem>>, %arg7: memref<64x1xf32, #tpu.memory_space<vmem>>, %arg8: memref<1x64xf32, #tpu.memory_space<vmem>>, %arg9: memref<1x1xf32, #tpu.memory_space<vmem>>, %arg10: memref<1x128xf32, #tpu.memory_space<vmem>>) attributes {dimension_semantics = [#tpu.dimension_semantics<parallel>], iteration_bounds = array<i64: 1>, scalar_prefetch = 0 : i64, scratch_operands = 0 : i64, tpu.core_type = #tpu.core_type<tc>, window_params = [{transform_indices = @transform_0, window_bounds = array<i64: 4, 128>}, {pipeline_mode = #tpu.pipeline_mode<synchronous>, transform_indices = @transform_1, window_bounds = array<i64: 256, 4>}, {pipeline_mode = #tpu.pipeline_mode<synchronous>, transform_indices = @transform_2, window_bounds = array<i64: 256, 1>}, {pipeline_mode = #tpu.pipeline_mode<synchronous>, transform_indices = @transform_3, window_bounds = array<i64: 128, 256>}, {pipeline_mode = #tpu.pipeline_mode<synchronous>, transform_indices = @transform_4, window_bounds = array<i64: 128, 1>}, {pipeline_mode = #tpu.pipeline_mode<synchronous>, transform_indices = @transform_5, window_bounds = array<i64: 64, 128>}, {pipeline_mode = #tpu.pipeline_mode<synchronous>, transform_indices = @transform_6, window_bounds = array<i64: 64, 1>}, {pipeline_mode = #tpu.pipeline_mode<synchronous>, transform_indices = @transform_7, window_bounds = array<i64: 1, 64>}, {pipeline_mode = #tpu.pipeline_mode<synchronous>, transform_indices = @transform_8, window_bounds = array<i64: 1, 1>}, {transform_indices = @transform_9, window_bounds = array<i64: 1, 128>}]} {
    %c0 = arith.constant 0 : index
    %c0_0 = arith.constant 0 : index
    %0 = vector.load %arg1[%c0, %c0_0] : memref<4x128xf32, #tpu.memory_space<vmem>>, vector<4x128xf32>
    %c0_1 = arith.constant 0 : index
    %c0_2 = arith.constant 0 : index
    %1 = vector.load %arg2[%c0_1, %c0_2] : memref<256x4xf32, #tpu.memory_space<vmem>>, vector<256x4xf32>
    %c0_3 = arith.constant 0 : index
    %c0_4 = arith.constant 0 : index
    %2 = vector.load %arg3[%c0_3, %c0_4] : memref<256x1xf32, #tpu.memory_space<vmem>>, vector<256x1xf32>
    %3 = vector.extract_strided_slice %1 {offsets = [0, 0], sizes = [256, 1], strides = [1, 1]} : vector<256x4xf32> to vector<256x1xf32>
    %4 = vector.extract_strided_slice %0 {offsets = [0, 0], sizes = [1, 128], strides = [1, 1]} : vector<4x128xf32> to vector<1x128xf32>
    %5 = vector.broadcast %3 : vector<256x1xf32> to vector<256x128xf32>
    %6 = vector.broadcast %4 : vector<1x128xf32> to vector<256x128xf32>
    %7 = arith.mulf %5, %6 : vector<256x128xf32>
    %8 = vector.broadcast %2 : vector<256x1xf32> to vector<256x128xf32>
    %9 = arith.addf %8, %7 : vector<256x128xf32>
    %10 = vector.extract_strided_slice %1 {offsets = [0, 1], sizes = [256, 1], strides = [1, 1]} : vector<256x4xf32> to vector<256x1xf32>
    %11 = vector.extract_strided_slice %0 {offsets = [1, 0], sizes = [1, 128], strides = [1, 1]} : vector<4x128xf32> to vector<1x128xf32>
    %12 = vector.broadcast %10 : vector<256x1xf32> to vector<256x128xf32>
    %13 = vector.broadcast %11 : vector<1x128xf32> to vector<256x128xf32>
    %14 = arith.mulf %12, %13 : vector<256x128xf32>
    %15 = arith.addf %9, %14 : vector<256x128xf32>
    %16 = vector.extract_strided_slice %1 {offsets = [0, 2], sizes = [256, 1], strides = [1, 1]} : vector<256x4xf32> to vector<256x1xf32>
    %17 = vector.extract_strided_slice %0 {offsets = [2, 0], sizes = [1, 128], strides = [1, 1]} : vector<4x128xf32> to vector<1x128xf32>
    %18 = vector.broadcast %16 : vector<256x1xf32> to vector<256x128xf32>
    %19 = vector.broadcast %17 : vector<1x128xf32> to vector<256x128xf32>
    %20 = arith.mulf %18, %19 : vector<256x128xf32>
    %21 = arith.addf %15, %20 : vector<256x128xf32>
    %22 = vector.extract_strided_slice %1 {offsets = [0, 3], sizes = [256, 1], strides = [1, 1]} : vector<256x4xf32> to vector<256x1xf32>
    %23 = vector.extract_strided_slice %0 {offsets = [3, 0], sizes = [1, 128], strides = [1, 1]} : vector<4x128xf32> to vector<1x128xf32>
    %24 = vector.broadcast %22 : vector<256x1xf32> to vector<256x128xf32>
    %25 = vector.broadcast %23 : vector<1x128xf32> to vector<256x128xf32>
    %26 = arith.mulf %24, %25 : vector<256x128xf32>
    %27 = arith.addf %21, %26 : vector<256x128xf32>
    %cst = arith.constant 0.000000e+00 : f32
    %28 = vector.broadcast %cst : f32 to vector<256x128xf32>
    %29 = arith.cmpf oge, %27, %28 : vector<256x128xf32>
    %cst_5 = arith.constant 2.000000e-01 : f32
    %30 = vector.broadcast %cst_5 : f32 to vector<256x128xf32>
    %31 = arith.mulf %30, %27 : vector<256x128xf32>
    %32 = arith.select %29, %27, %31 : vector<256x128xi1>, vector<256x128xf32>
    %c0_6 = arith.constant 0 : index
    %c0_7 = arith.constant 0 : index
    %33 = vector.load %arg4[%c0_6, %c0_7] : memref<128x256xf32, #tpu.memory_space<vmem>>, vector<128x256xf32>
    %cst_8 = arith.constant dense<0.000000e+00> : vector<128x128xf32>
    %34 = tpu.matmul %33, %32, %cst_8 {dimension_numbers = #tpu.dot_dimension_numbers<[1], [0], [0], [1], [0, 0, 1, 1], [], []>} : vector<128x256xf32>, vector<256x128xf32>, vector<128x128xf32> -> vector<128x128xf32>
    %c0_9 = arith.constant 0 : index
    %c0_10 = arith.constant 0 : index
    %35 = vector.load %arg5[%c0_9, %c0_10] : memref<128x1xf32, #tpu.memory_space<vmem>>, vector<128x1xf32>
    %36 = vector.broadcast %35 : vector<128x1xf32> to vector<128x128xf32>
    %37 = arith.addf %34, %36 : vector<128x128xf32>
    %cst_11 = arith.constant 0.000000e+00 : f32
    %38 = vector.broadcast %cst_11 : f32 to vector<128x128xf32>
    %39 = arith.cmpf oge, %37, %38 : vector<128x128xf32>
    %cst_12 = arith.constant 2.000000e-01 : f32
    %40 = vector.broadcast %cst_12 : f32 to vector<128x128xf32>
    %41 = arith.mulf %40, %37 : vector<128x128xf32>
    %42 = arith.select %39, %37, %41 : vector<128x128xi1>, vector<128x128xf32>
    %c0_13 = arith.constant 0 : index
    %c0_14 = arith.constant 0 : index
    %43 = vector.load %arg6[%c0_13, %c0_14] : memref<64x128xf32, #tpu.memory_space<vmem>>, vector<64x128xf32>
    %cst_15 = arith.constant dense<0.000000e+00> : vector<64x128xf32>
    %44 = tpu.matmul %43, %42, %cst_15 {dimension_numbers = #tpu.dot_dimension_numbers<[1], [0], [0], [1], [0, 0, 1, 1], [], []>} : vector<64x128xf32>, vector<128x128xf32>, vector<64x128xf32> -> vector<64x128xf32>
    %c0_16 = arith.constant 0 : index
    %c0_17 = arith.constant 0 : index
    %45 = vector.load %arg7[%c0_16, %c0_17] : memref<64x1xf32, #tpu.memory_space<vmem>>, vector<64x1xf32>
    %46 = vector.broadcast %45 : vector<64x1xf32> to vector<64x128xf32>
    %47 = arith.addf %44, %46 : vector<64x128xf32>
    %cst_18 = arith.constant 0.000000e+00 : f32
    %48 = vector.broadcast %cst_18 : f32 to vector<64x128xf32>
    %49 = arith.cmpf oge, %47, %48 : vector<64x128xf32>
    %cst_19 = arith.constant 2.000000e-01 : f32
    %50 = vector.broadcast %cst_19 : f32 to vector<64x128xf32>
    %51 = arith.mulf %50, %47 : vector<64x128xf32>
    %52 = arith.select %49, %47, %51 : vector<64x128xi1>, vector<64x128xf32>
    %c0_20 = arith.constant 0 : index
    %c0_21 = arith.constant 0 : index
    %53 = vector.load %arg8[%c0_20, %c0_21] : memref<1x64xf32, #tpu.memory_space<vmem>>, vector<1x64xf32>
    %cst_22 = arith.constant dense<0.000000e+00> : vector<1x128xf32>
    %54 = tpu.matmul %53, %52, %cst_22 {dimension_numbers = #tpu.dot_dimension_numbers<[1], [0], [0], [1], [0, 0, 1, 1], [], []>} : vector<1x64xf32>, vector<64x128xf32>, vector<1x128xf32> -> vector<1x128xf32>
    %c0_23 = arith.constant 0 : index
    %c0_24 = arith.constant 0 : index
    %55 = vector.load %arg9[%c0_23, %c0_24] : memref<1x1xf32, #tpu.memory_space<vmem>>, vector<1x1xf32>
    %56 = vector.broadcast %55 : vector<1x1xf32> to vector<1x128xf32>
    %57 = arith.addf %54, %56 : vector<1x128xf32>
    %58 = arith.negf %57 : vector<1x128xf32>
    %59 = math.exp %58 : vector<1x128xf32>
    %cst_25 = arith.constant 1.000000e+00 : f32
    %60 = vector.broadcast %cst_25 : f32 to vector<1x128xf32>
    %61 = arith.addf %60, %59 : vector<1x128xf32>
    %62 = arith.divf %60, %61 : vector<1x128xf32>
    %c0_26 = arith.constant 0 : index
    %c0_27 = arith.constant 0 : index
    %63 = vector.load %arg10[%c0_26, %c0_27] : memref<1x128xf32, #tpu.memory_space<vmem>>, vector<1x128xf32>
    tpu.vector_store %arg10[%c0_26, %c0_27], %62 {strides = array<i32>} : memref<1x128xf32, #tpu.memory_space<vmem>>, vector<1x128xf32>,
    return
  }
  func.func @transform_0(%arg0: i32) -> (i32, i32) {
    %c0_i32 = arith.constant 0 : i32
    %c0_i32_0 = arith.constant 0 : i32
    return %c0_i32, %arg0 : i32, i32
  }
  func.func @transform_1(%arg0: i32) -> (i32, i32) {
    %c0_i32 = arith.constant 0 : i32
    %c0_i32_0 = arith.constant 0 : i32
    %c0_i32_1 = arith.constant 0 : i32
    return %c0_i32, %c0_i32_0 : i32, i32
  }
  func.func @transform_2(%arg0: i32) -> (i32, i32) {
    %c0_i32 = arith.constant 0 : i32
    %c0_i32_0 = arith.constant 0 : i32
    %c0_i32_1 = arith.constant 0 : i32
    return %c0_i32, %c0_i32_0 : i32, i32
  }
  func.func @transform_3(%arg0: i32) -> (i32, i32) {
    %c0_i32 = arith.constant 0 : i32
    %c0_i32_0 = arith.constant 0 : i32
    %c0_i32_1 = arith.constant 0 : i32
    return %c0_i32, %c0_i32_0 : i32, i32
  }
  func.func @transform_4(%arg0: i32) -> (i32, i32) {
    %c0_i32 = arith.constant 0 : i32
    %c0_i32_0 = arith.constant 0 : i32
    %c0_i32_1 = arith.constant 0 : i32
    return %c0_i32, %c0_i32_0 : i32, i32
  }
  func.func @transform_5(%arg0: i32) -> (i32, i32) {
    %c0_i32 = arith.constant 0 : i32
    %c0_i32_0 = arith.constant 0 : i32
    %c0_i32_1 = arith.constant 0 : i32
    return %c0_i32, %c0_i32_0 : i32, i32
  }
  func.func @transform_6(%arg0: i32) -> (i32, i32) {
    %c0_i32 = arith.constant 0 : i32
    %c0_i32_0 = arith.constant 0 : i32
    %c0_i32_1 = arith.constant 0 : i32
    return %c0_i32, %c0_i32_0 : i32, i32
  }
  func.func @transform_7(%arg0: i32) -> (i32, i32) {
    %c0_i32 = arith.constant 0 : i32
    %c0_i32_0 = arith.constant 0 : i32
    %c0_i32_1 = arith.constant 0 : i32
    return %c0_i32, %c0_i32_0 : i32, i32
  }
  func.func @transform_8(%arg0: i32) -> (i32, i32) {
    %c0_i32 = arith.constant 0 : i32
    %c0_i32_0 = arith.constant 0 : i32
    %c0_i32_1 = arith.constant 0 : i32
    return %c0_i32, %c0_i32_0 : i32, i32
  }
  func.func @transform_9(%arg0: i32) -> (i32, i32) {
    %c0_i32 = arith.constant 0 : i32
    %c0_i32_0 = arith.constant 0 : i32
    return %c0_i32, %arg0 : i32, i32
  }
}

</mosaic_0001>

<bundles_post_ra>
// kernel: tpu_custom_call.1
= control target key start
LH: loop header
LB: loop body
LE: loop exit
PB: predicated region body
PF: predicated region fallthrough
CT: control target
= control target key end

     0   :  { %s3376_s0 = inlined_call_operand.vmem [shape: f32[4,128], index: 0, kind: input, shape index: {}]   ;;  %s3377_s1 = inlined_call_operand.vmem [shape: f32[256,4], index: 1, kind: input, shape index: {}]   ;;  %s3378_s2 = inlined_call_operand.vmem [shape: f32[256,1], index: 2, kind: input, shape index: {}]   ;;  %s3379_s3 = inlined_call_operand.vmem [shape: f32[128,256], index: 3, kind: input, shape index: {}]   ;;  %s3380_s4 = inlined_call_operand.vmem [shape: f32[128,1], index: 4, kind: input, shape index: {}]   ;;  %s3381_s5 = inlined_call_operand.vmem [shape: f32[64,128], index: 5, kind: input, shape index: {}]   ;;  %s3382_s6 = inlined_call_operand.vmem [shape: f32[64,1], index: 6, kind: input, shape index: {}]   ;;  %s3383_s7 = inlined_call_operand.vmem [shape: f32[1,64], index: 7, kind: input, shape index: {}]   ;;  %s3384_s8 = inlined_call_operand.<no memory space> [shape: f32[1,1], index: 8, kind: input, shape index: {}]   ;;  %s3385_s9 = inlined_call_operand.hbm [shape: f32[1,128], index: 9, kind: output, shape index: {}]  }
   0x1   :  { %v14_v0 = vstv %s3384_s8 }
   0x2   :  { %15 = vst [vmem:[#allocation2] sm:$0x1] %v14_v0 }
   0x3   :  { %v2225_v1 = vld [vmem:[%s3377_s1 + $0x80] sm:$0xff]  ;;  %v3390_v3 = vmov 0   ;;  %v2239_v4 = vld [vmem:[%s3377_s1 + $0x88] sm:$0xff]  ;;  %v3388_v9 = vmov 1   ;;  %v2262_v10 = vld [vmem:[%s3377_s1 + $0x90] sm:$0xff] }
   0x4   :  { %v2230_v2 = vld [vmem:[%s3377_s1] sm:$0xff]  ;;  %2047 = vset.pattern.permute.xlu1 %v3390_v3  ;;  %2046 = vset.pattern.permute.xlu0 %v3390_v3  ;;  %v2244_v5 = vld [vmem:[%s3377_s1 + $0x8] sm:$0xff] }
   0x5   :  { %182 = vperm.xlu0 %2046, %v2225_v1   ;;  %102 = vperm.xlu1 %2047, %v2230_v2   ;;  %v84_v6 = vld [vmem:[%s3378_s2 + $0x80] sm:$0xff]  ;;  %v85_v7 = vld [vmem:[%s3378_s2 + $0x88] sm:$0xff] }
   0x6   :  { %v69_v8 = vld [vmem:[%s3378_s2 + $0x8] sm:$0xff] }
   0x9   :  { %187 = vperm.xlu0 %2046, %v2239_v4   ;;  %107 = vperm.xlu1 %2047, %v2244_v5  }
   0xd   :  { %378 = vperm.xlu0 %2046, %v84_v6   ;;  %383 = vperm.xlu1 %2047, %v85_v7  }
  0x11   :  { %303 = vperm.xlu0 %2046, %v69_v8   ;;  %2048 = vset.pattern.permute.xlu1 %v3388_v9 }
  0x12   :  { %557 = vperm.xlu1 %2048, %v2239_v4  }
  0x13   :  { %16 = vsyncpa [#allocation4], 0  ;;  %v68_v11 = vld [vmem:[%s3378_s2] sm:$0xff]  ;;  %v2272_v12 = vld [vmem:[%s3377_s1 + $0x18] sm:$0xff]  ;;  %v3394_v18 = vmov 2   ;;  %v3386_v28 = vmov 3  }
  0x14   :  { %v86_v13 = vld [vmem:[%s3378_s2 + $0x90] sm:$0xff]  ;;  %v2283_v14 = vld [vmem:[%s3377_s1 + $0x28] sm:$0xff]  ;;  %v88_v15 = vld [vmem:[%s3378_s2 + $0xa0] sm:$0xff] }
  0x15   :  { %192 = vperm.xlu0 %2046, %v2262_v10   ;;  %v2293_v16 = vld [vmem:[%s3377_s1 + $0x98] sm:$0xff]  ;;  %v90_v19 = vld [vmem:[%s3378_s2 + $0xb0] sm:$0xff]  ;;  %v2317_v21 = vld [vmem:[%s3377_s1 + $0x48] sm:$0xff] }
  0x16   :  { %2049 = vset.pattern.permute.xlu1 %v3390_v3  ;;  %v2300_v17 = vld [vmem:[%s3377_s1 + $0x38] sm:$0xff]  ;;  %v2311_v20 = vld [vmem:[%s3377_s1 + $0x10] sm:$0xff]  ;;  %v92_v22 = vld [vmem:[%s3378_s2 + $0xc0] sm:$0xff] }
  0x17   :  { %298 = vperm.xlu1 %2049, %v68_v11   ;;  %v2329_v23 = vld [vmem:[%s3377_s1 + $0x58] sm:$0xff]  ;;  %v94_v24 = vld [vmem:[%s3378_s2 + $0xd0] sm:$0xff]  ;;  %v2343_v26 = vld [vmem:[%s3377_s1 + $0x68] sm:$0xff] }
  0x18   :  { %3412 = vst [vmem:[#allocation6_spill] sm:$0xff] %v2329_v23  ;;  %v87_v25 = vld [vmem:[%s3378_s2 + $0x98] sm:$0xff]  ;;  %3413 = vst [vmem:[#allocation7_spill] sm:$0xff] %v2343_v26  ;;  %v96_v27 = vld [vmem:[%s3378_s2 + $0xe0] sm:$0xff] }
  0x19   :  { %117 = vperm.xlu0 %2046, %v2272_v12   ;;  %v51_v29 = vld [vmem:[%s3377_s1 + $0x78] sm:$0xff]  ;;  %v70_v30 = vld [vmem:[%s3378_s2 + $0x10] sm:$0xff]  ;;  %v2377_v33 = vld [vmem:[%s3377_s1 + $0xa0] sm:$0xff] }
  0x1a   :  { %v98_v31 = vld [vmem:[%s3378_s2 + $0xf0] sm:$0xff]  ;;  %v71_v32 = vld [vmem:[%s3378_s2 + $0x18] sm:$0xff]  ;;  %v2385_v34 = vld [vmem:[%s3377_s1 + $0x20] sm:$0xff] }
  0x1b   :  { %2050 = vset.pattern.permute.xlu1 %v3388_v9  ;;  %v2390_v35 = vld [vmem:[%s3377_s1 + $0xa8] sm:$0xff]  ;;  %v2397_v36 = vld [vmem:[%s3377_s1 + $0xb0] sm:$0xff]  ;;  %v2411_v38 = vld [vmem:[%s3377_s1 + $0xc0] sm:$0xff] }
  0x1c   :  { %489 = vperm.xlu1 %2050, %v2230_v2   ;;  %v2404_v37 = vld [vmem:[%s3377_s1 + $0x30] sm:$0xff]  ;;  %3414 = vst [vmem:[#allocation8_spill] sm:$0xff] %v2411_v38  ;;  %v2419_v39 = vld [vmem:[%s3377_s1 + $0x40] sm:$0xff]  ;;  %v89_v42 = vld [vmem:[%s3378_s2 + $0xa8] sm:$0xff] }
  0x1d   :  { %388 = vperm.xlu0 %2046, %v86_v13   ;;  %v2427_v40 = vld [vmem:[%s3377_s1 + $0xd0] sm:$0xff]  ;;  %v2444_v43 = vld [vmem:[%s3377_s1 + $0xe0] sm:$0xff]  ;;  %v73_v52 = vld [vmem:[%s3378_s2 + $0x28] sm:$0xff] }
  0x1e   :  { %3415 = vst [vmem:[#allocation9_spill] sm:$0xff] %v2427_v40  ;;  %v2434_v41 = vld [vmem:[%s3377_s1 + $0x50] sm:$0xff]  ;;  %3416 = vst [vmem:[#allocation10_spill] sm:$0xff] %v2444_v43  ;;  %v2451_v44 = vld [vmem:[%s3377_s1 + $0x60] sm:$0xff] }
  0x1f   :  { %3417 = vst [vmem:[#allocation11_spill] sm:$0xff] %v2451_v44  ;;  %v2458_v45 = vld [vmem:[%s3377_s1 + $0xf0] sm:$0xff]  ;;  %v72_v49 = vld [vmem:[%s3378_s2 + $0x20] sm:$0xff]  ;;  %v2516_v62 = vld [vmem:[%s3377_s1 + $0xb8] sm:$0xff] }
  0x20   :  { %493 = vperm.xlu1 %2050, %v2244_v5   ;;  %3418 = vst [vmem:[#allocation12_spill] sm:$0xff] %v2458_v45  ;;  %v2470_v48 = vld [vmem:[%s3377_s1 + $0x70] sm:$0xff] }
  0x21   :  { %127 = vperm.xlu0 %2046, %v2283_v14   ;;  %3419 = vst [vmem:[#allocation13_spill] sm:$0xff] %v2470_v48 }
  0x24   :  { %2051 = vset.pattern.permute.xlu1 %v3390_v3 }
  0x25   :  { %398 = vperm.xlu0 %2046, %v88_v15   ;;  %197 = vperm.xlu1 %2051, %v2293_v16  }
  0x29   :  { %137 = vperm.xlu0 %2046, %v2300_v17   ;;  %2052 = vset.pattern.permute.xlu1 %v3394_v18 }
  0x2a   :  { %753 = vperm.xlu1 %2052, %v2239_v4  }
  0x2d   :  { %408 = vperm.xlu0 %2046, %v90_v19   ;;  %v91_v19 = vld [vmem:[%s3378_s2 + $0xb8] sm:$0xff] }
  0x2e   :  { %2053 = vset.pattern.permute.xlu1 %v3390_v3 }
  0x2f   :  { %112 = vperm.xlu1 %2053, %v2311_v20  }
  0x31   :  { %147 = vperm.xlu0 %2046, %v2317_v21  }
  0x33   :  { %2054 = vset.pattern.permute.xlu1 %v3394_v18 }
  0x34   :  { %685 = vperm.xlu1 %2054, %v2230_v2  }
  0x35   :  { %418 = vperm.xlu0 %2046, %v92_v22  }
  0x38   :  { %689 = vperm.xlu1 %2054, %v2244_v5  }
  0x39   :  { %157 = vperm.xlu0 %2046, %v2329_v23  }
  0x3c   :  { %2055 = vset.pattern.permute.xlu1 %v3390_v3 }
  0x3d   :  { %428 = vperm.xlu0 %2046, %v94_v24   ;;  %393 = vperm.xlu1 %2055, %v87_v25   ;;  %v74_v25 = vld [vmem:[%s3378_s2 + $0x30] sm:$0xff] }
  0x41   :  { %167 = vperm.xlu0 %2046, %v2343_v26   ;;  %2056 = vset.pattern.permute.xlu1 %v3388_v9 }
  0x42   :  { %565 = vperm.xlu1 %2056, %v2293_v16  }
  0x45   :  { %438 = vperm.xlu0 %2046, %v96_v27  }
  0x46   :  { %2057 = vset.pattern.permute.xlu1 %v3386_v28 }
  0x47   :  { %945 = vperm.xlu1 %2057, %v2225_v1  }
  0x49   :  { %177 = vperm.xlu0 %2046, %v51_v29  }
  0x4b   :  { %2058 = vset.pattern.permute.xlu1 %v3390_v3 }
  0x4c   :  { %308 = vperm.xlu1 %2058, %v70_v30   ;;  %v75_v30 = vld [vmem:[%s3378_s2 + $0x38] sm:$0xff] }
  0x4d   :  { %448 = vperm.xlu0 %2046, %v98_v31  }
  0x50   :  { %313 = vperm.xlu1 %2058, %v71_v32  }
  0x51   :  { %2115 = vset.pattern.permute.xlu0 %v3388_v9 }
  0x52   :  { %553 = vperm.xlu0 %2115, %v2225_v1  }
  0x54   :  { %2059 = vset.pattern.permute.xlu1 %v3388_v9 }
  0x55   :  { %501 = vperm.xlu1 %2059, %v2272_v12  }
  0x56   :  { %561 = vperm.xlu0 %2115, %v2262_v10  }
  0x59   :  { %2060 = vset.pattern.permute.xlu1 %v3386_v28 }
  0x5a   :  { %497 = vperm.xlu0 %2115, %v2311_v20   ;;  %881 = vperm.xlu1 %2060, %v2230_v2  }
  0x5e   :  { %569 = vperm.xlu0 %2115, %v2377_v33   ;;  %2061 = vset.pattern.permute.xlu1 %v3390_v3 }
  0x5f   :  { %202 = vperm.xlu1 %2061, %v2377_v33  }
  0x62   :  { %505 = vperm.xlu0 %2115, %v2385_v34  }
  0x63   :  { %207 = vperm.xlu1 %2061, %v2390_v35  }
  0x66   :  { %577 = vperm.xlu0 %2115, %v2397_v36  }
  0x67   :  { %2062 = vset.pattern.permute.xlu1 %v3394_v18 }
  0x68   :  { %761 = vperm.xlu1 %2062, %v2293_v16  }
  0x6a   :  { %513 = vperm.xlu0 %2115, %v2404_v37  }
  0x6c   :  { %2063 = vset.pattern.permute.xlu1 %v3390_v3 }
  0x6d   :  { %122 = vperm.xlu1 %2063, %v2385_v34  }
  0x6e   :  { %585 = vperm.xlu0 %2115, %v2411_v38  }
  0x71   :  { %2064 = vset.pattern.permute.xlu1 %v3394_v18 }
  0x72   :  { %521 = vperm.xlu0 %2115, %v2419_v39   ;;  %693 = vperm.xlu1 %2064, %v2311_v20  }
  0x76   :  { %593 = vperm.xlu0 %2115, %v2427_v40   ;;  %697 = vperm.xlu1 %2064, %v2272_v12  }
  0x7a   :  { %529 = vperm.xlu0 %2115, %v2434_v41   ;;  %2065 = vset.pattern.permute.xlu1 %v3390_v3 }
  0x7b   :  { %403 = vperm.xlu1 %2065, %v89_v42  }
  0x7e   :  { %601 = vperm.xlu0 %2115, %v2444_v43  }
  0x7f   :  { %2066 = vset.pattern.permute.xlu1 %v3388_v9 }
  0x80   :  { %573 = vperm.xlu1 %2066, %v2390_v35  }
  0x82   :  { %537 = vperm.xlu0 %2115, %v2451_v44   ;;  %v3445_v44 = vmov 3  }
  0x84   :  { %v2460_v46 = vpop.permute.xlu0 %182  ;;  %2067 = vset.pattern.permute.xlu1 %v3386_v28  ;;  %v2463_v47 = vpop.permute.xlu1 %102 }
  0x85   :  { %953 = vperm.xlu1 %2067, %v2262_v10  }
  0x86   :  { %609 = vperm.xlu0 %2115, %v2458_v45  }
  0x88   :  { %v2475_v50 = vpop.permute.xlu0 %187  ;;  %v2477_v51 = vpop.permute.xlu1 %107 }
  0x89   :  { %2068 = vset.pattern.permute.xlu1 %v3390_v3 }
  0x8a   :  { %545 = vperm.xlu0 %2115, %v2470_v48   ;;  %318 = vperm.xlu1 %2068, %v72_v49  }
  0x8c   :  { %v2484_v53 = vpop.permute.xlu0 %378  ;;  %v2486_v54 = vpop.permute.xlu1 %383 }
  0x8e   :  { %2120 = vset.pattern.permute.xlu0 %v3394_v18  ;;  %323 = vperm.xlu1 %2068, %v73_v52   ;;  %v2620_v52 = vld [vmem:[%s3377_s1 + $0xd8] sm:$0xff] }
  0x8f   :  { %749 = vperm.xlu0 %2120, %v2225_v1   ;;  %3431 = vst [vmem:[#allocation25_spill] sm:$0xff] %v2620_v52 }
  0x90   :  { %v2490_v55 = vpop.permute.xlu0 %303 }
  0x91   :  { %v2492_v56 = vpop.permute.xlu1 %557 }
  0x92   :  { %2069 = vset.pattern.permute.xlu1 %v3388_v9 }
  0x93   :  { %757 = vperm.xlu0 %2120, %v2262_v10   ;;  %509 = vperm.xlu1 %2069, %v2283_v14  }
  0x94   :  { %v2497_v57 = vpop.permute.xlu0 %192 }
  0x96   :  { %v2499_v58 = vpop.permute.xlu1 %298 }
  0x97   :  { %765 = vperm.xlu0 %2120, %v2377_v33   ;;  %2070 = vset.pattern.permute.xlu1 %v3386_v28 }
  0x98   :  { %889 = vperm.xlu1 %2070, %v2311_v20   ;;  %v2504_v59 = vpop.permute.xlu0 %117 }
  0x9b   :  { %773 = vperm.xlu0 %2120, %v2397_v36   ;;  %v2507_v60 = vpop.permute.xlu1 %489 }
  0x9c   :  { %2071 = vset.pattern.permute.xlu1 %v3390_v3  ;;  %v2510_v61 = vpop.permute.xlu0 %388 }
  0x9d   :  { %212 = vperm.xlu1 %2071, %v2397_v36  }
  0x9f   :  { %781 = vperm.xlu0 %2120, %v2411_v38   ;;  %v2519_v63 = vpop.permute.xlu1 %493 }
  0xa0   :  { %v2521_v0 = vpop.permute.xlu0 %127 }
  0xa1   :  { %3420 = vst [vmem:[#allocation14_spill] sm:$0xff] %v2521_v0  ;;  %217 = vperm.xlu1 %2071, %v2516_v62  }
  0xa3   :  { %789 = vperm.xlu0 %2120, %v2427_v40  }
  0xa4   :  { %v2525_v1 = vpop.permute.xlu1 %197  ;;  %v2527_v2 = vpop.permute.xlu0 %398 }
  0xa5   :  { %3421 = vst [vmem:[#allocation15_spill] sm:$0xff] %v2527_v2  ;;  %2072 = vset.pattern.permute.xlu1 %v3394_v18 }
  0xa6   :  { %769 = vperm.xlu1 %2072, %v2390_v35  }
  0xa7   :  { %797 = vperm.xlu0 %2120, %v2444_v43   ;;  %v260_v43 = vlaneseq }
  0xa8   :  { %v2532_v6 = vpop.permute.xlu0 %137 }
  0xa9   :  { %3422 = vst [vmem:[#allocation16_spill] sm:$0xff] %v2532_v6  ;;  %v2534_v7 = vpop.permute.xlu1 %753  ;;  %v3443_v6 = vmov 1  }
  0xaa   :  { %2073 = vset.pattern.permute.xlu1 %v3390_v3 }
  0xab   :  { %741 = vperm.xlu0 %2120, %v2470_v48   ;;  %132 = vperm.xlu1 %2073, %v2404_v37  }
  0xac   :  { %v2539_v8 = vpop.permute.xlu0 %408 }
  0xae   :  { %v2541_v10 = vpop.permute.xlu1 %112 }
  0xaf   :  { %2124 = vset.pattern.permute.xlu0 %v3386_v28  ;;  %2074 = vset.pattern.permute.xlu1 %v3394_v18 }
  0xb0   :  { %949 = vperm.xlu0 %2124, %v2239_v4   ;;  %701 = vperm.xlu1 %2074, %v2385_v34   ;;  %v2547_v11 = vpop.permute.xlu0 %147 }
  0xb1   :  { %3423 = vst [vmem:[#allocation17_spill] sm:$0xff] %v2547_v11 }
  0xb3   :  { %v2549_v13 = vpop.permute.xlu1 %685 }
  0xb4   :  { %885 = vperm.xlu0 %2124, %v2244_v5   ;;  %705 = vperm.xlu1 %2074, %v2283_v14   ;;  %v2553_v15 = vpop.permute.xlu0 %418 }
  0xb5   :  { %3424 = vst [vmem:[#allocation18_spill] sm:$0xff] %v2553_v15 }
  0xb7   :  { %v2558_v20 = vpop.permute.xlu1 %689 }
  0xb8   :  { %957 = vperm.xlu0 %2124, %v2293_v16   ;;  %2075 = vset.pattern.permute.xlu1 %v3390_v3  ;;  %v2562_v4 = vpop.permute.xlu0 %157 }
  0xb9   :  { %3425 = vst [vmem:[#allocation19_spill] sm:$0xff] %v2562_v4  ;;  %413 = vperm.xlu1 %2075, %v91_v19  }
  0xbc   :  { %893 = vperm.xlu0 %2124, %v2272_v12   ;;  %v2565_v5 = vpop.permute.xlu1 %393  ;;  %v2567_v22 = vpop.permute.xlu0 %428 }
  0xbd   :  { %3426 = vst [vmem:[#allocation20_spill] sm:$0xff] %v2567_v22  ;;  %2076 = vset.pattern.permute.xlu1 %v3388_v9  ;;  %v93_v22 = vld [vmem:[%s3378_s2 + $0xc8] sm:$0xff] }
  0xbe   :  { %581 = vperm.xlu1 %2076, %v2516_v62  }
  0xc0   :  { %965 = vperm.xlu0 %2124, %v2390_v35   ;;  %v2572_v24 = vpop.permute.xlu0 %167 }
  0xc1   :  { %3427 = vst [vmem:[#allocation21_spill] sm:$0xff] %v2572_v24  ;;  %v2574_v16 = vpop.permute.xlu1 %565  ;;  %v3435_v24 = vmov 0  }
  0xc2   :  { %2077 = vset.pattern.permute.xlu1 %v3386_v28 }
  0xc3   :  { %961 = vperm.xlu1 %2077, %v2377_v33   ;;  %v2603_v33 = vld [vmem:[%s3377_s1 + $0xc8] sm:$0xff] }
  0xc4   :  { %901 = vperm.xlu0 %2124, %v2283_v14   ;;  %v2579_v12 = vpop.permute.xlu0 %438 }
  0xc5   :  { %3428 = vst [vmem:[#allocation22_spill] sm:$0xff] %v2579_v12 }
  0xc6   :  { %v2584_v27 = vpop.permute.xlu1 %945 }
  0xc7   :  { %2078 = vset.pattern.permute.xlu1 %v3390_v3 }
  0xc8   :  { %328 = vperm.xlu1 %2078, %v74_v25   ;;  %v2587_v29 = vpop.permute.xlu0 %177  ;;  %973 = vperm.xlu0 %2124, %v2516_v62  }
  0xc9   :  { %3429 = vst [vmem:[#allocation23_spill] sm:$0xff] %v2587_v29 }
  0xcb   :  { %v2593_v14 = vpop.permute.xlu1 %308 }
  0xcc   :  { %333 = vperm.xlu1 %2078, %v75_v30   ;;  %v2595_v31 = vpop.permute.xlu0 %448  ;;  %909 = vperm.xlu0 %2124, %v2300_v17  }
  0xcd   :  { %3430 = vst [vmem:[#allocation24_spill] sm:$0xff] %v2595_v31 }
  0xcf   :  { %v2598_v32 = vpop.permute.xlu1 %313 }
  0xd0   :  { %2079 = vset.pattern.permute.xlu1 %v3388_v9  ;;  %981 = vperm.xlu0 %2124, %v2603_v33  }
  0xd1   :  { %v2607_v35 = vpop.permute.xlu0 %553  ;;  %517 = vperm.xlu1 %2079, %v2300_v17  }
  0xd4   :  { %v2610_v42 = vpop.permute.xlu1 %501  ;;  %917 = vperm.xlu0 %2124, %v2317_v21  }
  0xd5   :  { %v2613_v49 = vpop.permute.xlu0 %561  ;;  %2080 = vset.pattern.permute.xlu1 %v3386_v28  ;;  %v2638_v28 = vld [vmem:[%s3377_s1 + $0xe8] sm:$0xff] }
  0xd6   :  { %897 = vperm.xlu1 %2080, %v2385_v34   ;;  %3433 = vst [vmem:[#allocation27_spill] sm:$0xff] %v2638_v28 }
  0xd8   :  { %989 = vperm.xlu0 %2124, %v2620_v52  }
  0xd9   :  { %v2623_v19 = vpop.permute.xlu0 %497  ;;  %v2625_v25 = vpop.permute.xlu1 %881 }
  0xda   :  { %2081 = vset.pattern.permute.xlu1 %v3390_v3 }
  0xdb   :  { %222 = vperm.xlu1 %2081, %v2411_v38  }
  0xdc   :  { %925 = vperm.xlu0 %2124, %v2329_v23  }
  0xdd   :  { %v2630_v30 = vpop.permute.xlu0 %569 }
  0xde   :  { %3432 = vst [vmem:[#allocation26_spill] sm:$0xff] %v2630_v30  ;;  %v2632_v34 = vpop.permute.xlu1 %202 }
  0xdf   :  { %227 = vperm.xlu1 %2081, %v2603_v33  }
  0xe0   :  { %997 = vperm.xlu0 %2124, %v2638_v28  }
  0xe1   :  { %v2641_v9 = vpop.permute.xlu0 %505 }
  0xe2   :  { %3434 = vst [vmem:[#allocation28_spill] sm:$0xff] %v2641_v9  ;;  %v2643_v3 = vpop.permute.xlu1 %207 }
  0xe3   :  { %2082 = vset.pattern.permute.xlu1 %v3394_v18 }
  0xe4   :  { %777 = vperm.xlu1 %2082, %v2516_v62   ;;  %933 = vperm.xlu0 %2124, %v2343_v26  }
  0xe5   :  { %v578_v29 = vpop.permute.xlu0 %577 }
  0xe7   :  { %v2648_v31 = vpop.permute.xlu1 %761 }
  0xe8   :  { %2083 = vset.pattern.permute.xlu1 %v3435_v24 }
  0xe9   :  { %142 = vperm.xlu1 %2083, %v2419_v39   ;;  %v2652_v4 = vpop.permute.xlu0 %513 }
  0xea   :  { %3436 = vst [vmem:[#allocation29_spill] sm:$0xff] %v2652_v4 }
  0xec   :  { %v2654_v12 = vpop.permute.xlu1 %122 }
  0xed   :  { %3437 = vst [vmem:[#allocation30_spill] sm:$0xff] %v2654_v12  ;;  %2084 = vset.pattern.permute.xlu1 %v3394_v18  ;;  %v2657_v11 = vpop.permute.xlu0 %585  ;;  %v35_v12 = vld [vmem:[%s3376_s0] sm:$0xf]  ;;  %s2168_s0 = smov [#allocation3]  }
  0xee   :  { %3438 = vst [vmem:[#allocation31_spill] sm:$0xff] %v2657_v11  ;;  %709 = vperm.xlu1 %2084, %v2404_v37   ;;  %s1776_s13 = sshll.u32 %s2168_s0, 4  ;;  %s1777_s13 = int_to_ptr.vmem [resolvable:$true] %s1776_s13 }
  0xef   :  { %s2141_s14 = scalar_lea.vmem %s1777_s13, 32  ;;  %p2142_p1 = scmp.lt.s32.totalorder %s1777_s13, %s1777_s13 }
  0xf1   :  { %v2660_v62 = vpop.permute.xlu1 %693  ;;  %v2662_v48 = vpop.permute.xlu0 %521 }
  0xf2   :  { %3439 = vst [vmem:[#allocation32_spill] sm:$0xff] %v2662_v48  ;;  %713 = vperm.xlu1 %2084, %v2300_v17  }
  0xf5   :  { %v2668_v45 = vpop.permute.xlu1 %697  ;;  %v2670_v4 = vpop.permute.xlu0 %593 }
  0xf6   :  { %3440 = vst [vmem:[#allocation33_spill] sm:$0xff] %v2670_v4  ;;  %2085 = vset.pattern.permute.xlu1 %v3435_v24 }
  0xf7   :  { %423 = vperm.xlu1 %2085, %v93_v22   ;;  %v76_v22 = vld [vmem:[%s3378_s2 + $0x40] sm:$0xff] }
  0xf9   :  { %v2673_v18 = vpop.permute.xlu0 %529 }
  0xfa   :  { %3441 = vst [vmem:[#allocation34_spill] sm:$0xff] %v2673_v18  ;;  %v2675_v26 = vpop.permute.xlu1 %403 }
  0xfb   :  { %3442 = vst [vmem:[#allocation35_spill] sm:$0xff] %v2675_v26  ;;  %2086 = vset.pattern.permute.xlu1 %v3443_v6  ;;  %v3455_v26 = vmov 2  }
  0xfc   :  { %589 = vperm.xlu1 %2086, %v2603_v33  }
  0xfd   :  { %v2679_v17 = vpop.permute.xlu0 %601 }
  0xfe   :  { %3444 = vst [vmem:[#allocation36_spill] sm:$0xff] %v2679_v17  ;;  %v77_v17 = vld [vmem:[%s3378_s2 + $0x48] sm:$0xff] }
  0xff   :  { %v2681_v48 = vpop.permute.xlu1 %573 }
 0x100   :  { %2087 = vset.pattern.permute.xlu1 %v3445_v44 }
 0x101   :  { %969 = vperm.xlu1 %2087, %v2397_v36   ;;  %v2685_v4 = vpop.permute.xlu0 %537 }
 0x102   :  { %3446 = vst [vmem:[#allocation37_spill] sm:$0xff] %v2685_v4 }
 0x104   :  { %v2690_v18 = vpop.permute.xlu1 %953 }
 0x105   :  { %2088 = vset.pattern.permute.xlu1 %v3435_v24  ;;  %v2693_v15 = vpop.permute.xlu0 %609 }
 0x106   :  { %3447 = vst [vmem:[#allocation38_spill] sm:$0xff] %v2693_v15  ;;  %338 = vperm.xlu1 %2088, %v76_v22   ;;  %v2710_v15 = vshrl.u32 %v260_v43, 7  ;;  %v2727_v43 = vld [vmem:[%s3377_s1 + $0xf8] sm:$0xff] }
 0x107   :  { %3453 = vst [vmem:[#allocation44_spill] sm:$0xff] %v2727_v43  ;;  %1005 = vperm.xlu0 %2124, %v2727_v43  }
 0x108   :  { %v3454_v23 = vsub.s32 0, %v2710_v15 }
 0x109   :  { %v2698_v28 = vpop.permute.xlu1 %318  ;;  %v2700_v36 = vpop.permute.xlu0 %545 }
 0x10a   :  { %3448 = vst [vmem:[#allocation39_spill] sm:$0xff] %v2698_v28  ;;  %3449 = vst [vmem:[#allocation40_spill] sm:$0xff] %v2700_v36  ;;  %343 = vperm.xlu1 %2088, %v77_v17   ;;  %v618_v28 = vsub.s32 1, %v2710_v15 }
 0x10b   :  { %2126 = vset.pattern.permute.xlu0 %v3435_v24 }
 0x10c   :  { %v2736_v0 = vrot.slane %v35_v12, %v618_v28 }
 0x10d   :  { %v2702_v4 = vpop.permute.xlu1 %323 }
 0x10e   :  { %3450 = vst [vmem:[#allocation41_spill] sm:$0xff] %v2702_v4  ;;  %v750_v11 = vpop.permute.xlu0 %749  ;;  %2089 = vset.pattern.permute.xlu1 %v3443_v6 }
 0x10f   :  { %525 = vperm.xlu1 %2089, %v2317_v21  }
 0x112   :  { %v2706_v9 = vpop.permute.xlu0 %757  ;;  %v2708_v22 = vpop.permute.xlu1 %509 }
 0x113   :  { %3451 = vst [vmem:[#allocation42_spill] sm:$0xff] %v2708_v22  ;;  %2090 = vset.pattern.permute.xlu1 %v3445_v44  ;;  %v2734_v22 = vrot.slane %v35_v12, %v3454_v23  ;;  %v642_v44 = vmul.f32 %v2736_v0, %v578_v29  ;;  %v636_v29 = vmul.f32 %v2736_v0, %v2607_v35 }
 0x114   :  { %905 = vperm.xlu1 %2090, %v2404_v37   ;;  %v814_v37 = vsub.s32 2, %v2710_v15 }
 0x115   :  { %v280_v43 = vmul.f32 %v2734_v22, %v2460_v46  ;;  %v264_v35 = vmul.f32 %v2734_v22, %v2463_v47  ;;  %v621_v47 = vmul.f32 %v2736_v0, %v2519_v63  ;;  %v267_v63 = vmul.f32 %v2734_v22, %v2504_v59 }
 0x116   :  { %v2714_v36 = vpop.permute.xlu0 %765  ;;  %v283_v59 = vmul.f32 %v2734_v22, %v2525_v1 }
 0x117   :  { %3452 = vst [vmem:[#allocation43_spill] sm:$0xff] %v2714_v36  ;;  %v2718_v4 = vpop.permute.xlu1 %889  ;;  %v2738_v36 = vrot.slane %v35_v12, %v814_v37 }
 0x118   :  { %2091 = vset.pattern.permute.xlu1 %v3435_v24 }
 0x119   :  { %232 = vperm.xlu1 %2091, %v2427_v40  }
 0x11a   :  { %v774_v17 = vpop.permute.xlu0 %773 }
 0x11b   :  { %v838_v23 = vmul.f32 %v2738_v36, %v774_v17  ;;  %v1010_v17 = vsub.s32 3, %v2710_v15 }
 0x11c   :  { %v213_v38 = vpop.permute.xlu1 %212 }
 0x11d   :  { %v286_v2 = vmul.f32 %v2734_v22, %v213_v38  ;;  %237 = vperm.xlu1 %2091, %v2620_v52   ;;  %v472_v38 = vadd.f32 %v2484_v53, %v280_v43  ;;  %v832_v43 = vmul.f32 %v2738_v36, %v750_v11  ;;  %v620_v11 = vmul.f32 %v2736_v0, %v2507_v60 }
 0x11e   :  { %v2746_v40 = vpop.permute.xlu0 %781  ;;  %v833_v60 = vmul.f32 %v2738_v36, %v2534_v7 }
 0x11f   :  { %v478_v28 = vadd.f32 %v2539_v8, %v286_v2  ;;  %v282_v2 = vmul.f32 %v2734_v22, %v2497_v57  ;;  %v668_v53 = vadd.f32 %v636_v29, %v472_v38  ;;  %v637_v57 = vmul.f32 %v2736_v0, %v2492_v56 }
 0x120   :  { %v2750_v30 = vpop.permute.xlu1 %217 }
 0x121   :  { %v674_v37 = vadd.f32 %v642_v44, %v478_v28  ;;  %2092 = vset.pattern.permute.xlu1 %v3455_v26  ;;  %v281_v44 = vmul.f32 %v2734_v22, %v2475_v50  ;;  %v265_v50 = vmul.f32 %v2734_v22, %v2477_v51  ;;  %v474_v28 = vadd.f32 %v2510_v61, %v282_v2 }
 0x122   :  { %785 = vperm.xlu1 %2092, %v2603_v33   ;;  %v2757_v52 = vpop.permute.xlu0 %789  ;;  %v864_v29 = vadd.f32 %v832_v43, %v668_v53  ;;  %v816_v61 = vmul.f32 %v2738_v36, %v2549_v13  ;;  %v834_v13 = vmul.f32 %v2738_v36, %v2706_v9 }
 0x123   :  { %v2759_v46 = vadd.f32 %v838_v23, %v674_v37  ;;  %v2777_v23 = vrot.slane %v35_v12, %v1010_v17  ;;  %v638_v37 = vmul.f32 %v2736_v0, %v2613_v49  ;;  %v473_v38 = vadd.f32 %v2486_v54, %v281_v44 }
 0x124   :  { %v457_v51 = vadd.f32 %v2490_v55, %v265_v50  ;;  %v456_v17 = vadd.f32 %v2499_v58, %v264_v35  ;;  %v817_v49 = vmul.f32 %v2738_v36, %v2558_v20  ;;  %v639_v20 = vmul.f32 %v2736_v0, %v2574_v16 }
 0x125   :  { %v2764_v8 = vpop.permute.xlu1 %769  ;;  %v669_v54 = vadd.f32 %v637_v57, %v473_v38  ;;  %v1028_v55 = vmul.f32 %v2777_v23, %v2584_v27  ;;  %v670_v2 = vadd.f32 %v638_v37, %v474_v28  ;;  %v1012_v7 = vmul.f32 %v2777_v23, %v2625_v25 }
 0x126   :  { %2093 = vset.pattern.permute.xlu1 %v3435_v24  ;;  %v2770_v33 = vpop.permute.xlu0 %797  ;;  %v652_v58 = vadd.f32 %v620_v11, %v456_v17  ;;  %v653_v44 = vadd.f32 %v621_v47, %v457_v51  ;;  %v623_v35 = vmul.f32 %v2736_v0, %v2610_v42  ;;  %v266_v25 = vmul.f32 %v2734_v22, %v2541_v10  ;;  %v95_v10 = vld [vmem:[%s3378_s2 + $0xd8] sm:$0xff] }
 0x127   :  { %152 = vperm.xlu1 %2093, %v2434_v41   ;;  %v1060_v53 = vadd.f32 %v1028_v55, %v864_v29  ;;  %v865_v43 = vadd.f32 %v833_v60, %v669_v54  ;;  %v475_v11 = vadd.f32 %v2565_v5, %v283_v59  ;;  %v459_v16 = vadd.f32 %v2598_v32, %v267_v63 }
 0x128   :  { %v848_v27 = vadd.f32 %v816_v61, %v652_v58  ;;  %v849_v9 = vadd.f32 %v817_v49, %v653_v44  ;;  %v622_v28 = vmul.f32 %v2736_v0, %v2623_v19  ;;  %v866_v42 = vadd.f32 %v834_v13, %v670_v2 }
 0x129   :  { %v671_v38 = vadd.f32 %v639_v20, %v475_v11  ;;  %v458_v47 = vadd.f32 %v2593_v14, %v266_v25  ;;  %v1124_v5 = vmul.f32 0.2, %v1060_v53  ;;  %v655_v51 = vadd.f32 %v623_v35, %v459_v16  ;;  %v3456_v25 = vld [vmem:[#allocation25_spill] sm:$0xff] }
 0x12a   :  { %v2789_v56 = vpop.permute.xlu1 %132  ;;  %v2791_v12 = vpop.permute.xlu0 %741  ;;  %v1044_v37 = vadd.f32 %v1012_v7, %v848_v27  ;;  %v1030_v32 = vmul.f32 %v2777_v23, %v2690_v18  ;;  %vm1092_vm0 = vcmp.ge.f32.partialorder %v1060_v53, 0.0  ;;  %v818_v14 = vmul.f32 %v2738_v36, %v2660_v62 }
 0x12b   :  { %2094 = vset.pattern.permute.xlu1 %v3455_v26  ;;  %v654_v54 = vadd.f32 %v622_v28, %v458_v47  ;;  %v1014_v18 = vmul.f32 %v2777_v23, %v2718_v4  ;;  %v1156_v55 = vsel %vm1092_vm0, %v1060_v53, %v1124_v5  ;;  %v284_v62 = vmul.f32 %v2734_v22, %v2632_v34 }
 0x12c   :  { %717 = vperm.xlu1 %2094, %v2419_v39   ;;  %v1062_v63 = vadd.f32 %v1030_v32, %v866_v42  ;;  %vm1076_vm2 = vcmp.ge.f32.partialorder %v1044_v37, 0.0  ;;  %v819_v7 = vmul.f32 %v2738_v36, %v2668_v45  ;;  %v285_v4 = vmul.f32 %v2734_v22, %v2643_v3 }
 0x12d   :  { %v850_v59 = vadd.f32 %v818_v14, %v654_v54  ;;  %v641_v53 = vmul.f32 %v2736_v0, %v2681_v48  ;;  %v837_v3 = vmul.f32 %v2738_v36, %v2764_v8  ;;  %v3461_v8 = vld [vmem:[#allocation43_spill] sm:$0xff] }
 0x12e   :  { %v1126_v34 = vmul.f32 0.2, %v1062_v63  ;;  %v851_v11 = vadd.f32 %v819_v7, %v655_v51  ;;  %vm1094_vm4 = vcmp.ge.f32.partialorder %v1062_v63, 0.0 }
 0x12f   :  { %v950_v57 = vpop.permute.xlu0 %949  ;;  %v2817_v50 = vpop.permute.xlu1 %701  ;;  %v1046_v35 = vadd.f32 %v1014_v18, %v850_v59 }
 0x130   :  { %v1029_v1 = vmul.f32 %v2777_v23, %v950_v57  ;;  %721 = vperm.xlu1 %2094, %v2317_v21   ;;  %v835_v21 = vmul.f32 %v2738_v36, %v2648_v31  ;;  %v1108_v31 = vmul.f32 0.2, %v1044_v37  ;;  %v1158_v14 = vsel %vm1094_vm4, %v1062_v63, %v1126_v34  ;;  %v78_v63 = vld [vmem:[%s3378_s2 + $0x50] sm:$0xff] }
 0x131   :  { %v1110_v51 = vmul.f32 0.2, %v1046_v35  ;;  %vm1078_vm6 = vcmp.ge.f32.partialorder %v1046_v35, 0.0 }
 0x132   :  { %v1061_v29 = vadd.f32 %v1029_v1, %v865_v43  ;;  %v867_v2 = vadd.f32 %v835_v21, %v671_v38  ;;  %v1140_v45 = vsel %vm1076_vm2, %v1044_v37, %v1108_v31  ;;  %v3457_v1 = vld [vmem:[#allocation35_spill] sm:$0xff]  ;;  %v3458_v37 = vld [vmem:[#allocation26_spill] sm:$0xff]  ;;  %v3462_v31 = vld [vmem:[#allocation8_spill] sm:$0xff] }
 0x133   :  { %v886_v17 = vpop.permute.xlu0 %885  ;;  %v2835_v19 = vpop.permute.xlu1 %705  ;;  %v477_v16 = vadd.f32 %v3457_v1, %v285_v4  ;;  %v640_v47 = vmul.f32 %v2736_v0, %v3458_v37  ;;  %v3466_v37 = vld [vmem:[#allocation30_spill] sm:$0xff] }
 0x134   :  { %v1013_v60 = vmul.f32 %v2777_v23, %v886_v17  ;;  %2095 = vset.pattern.permute.xlu1 %v3435_v24  ;;  %vm1093_vm1 = vcmp.ge.f32.partialorder %v1061_v29, 0.0  ;;  %v1125_v61 = vmul.f32 0.2, %v1061_v29  ;;  %v3460_v17 = vmov 3  }
 0x135   :  { %433 = vperm.xlu1 %2095, %v95_v10   ;;  %v673_v5 = vadd.f32 %v641_v53, %v477_v16 }
 0x136   :  { %v1045_v49 = vadd.f32 %v1013_v60, %v849_v9  ;;  %v1157_v58 = vsel %vm1093_vm1, %v1061_v29, %v1125_v61  ;;  %v3459_v29 = vld [vmem:[#allocation15_spill] sm:$0xff]  ;;  %v836_v61 = vmul.f32 %v2738_v36, %v3461_v8 }
 0x137   :  { %v958_v13 = vpop.permute.xlu0 %957  ;;  %v1962_v44 = vpack.c.bf16 %v1157_v58, %v1156_v55  ;;  %v476_v10 = vadd.f32 %v3459_v29, %v284_v62  ;;  %v3467_v29 = vld [vmem:[#allocation41_spill] sm:$0xff] }
 0x138   :  { %v1031_v20 = vmul.f32 %v2777_v23, %v958_v13  ;;  %v2848_v43 = vpop.permute.xlu1 %413  ;;  %vm1077_vm3 = vcmp.ge.f32.partialorder %v1045_v49, 0.0  ;;  %v1109_v27 = vmul.f32 0.2, %v1045_v49  ;;  %v1142_v13 = vsel %vm1078_vm6, %v1046_v35, %v1110_v51  ;;  %v3468_v51 = vld [vmem:[#allocation28_spill] sm:$0xff] }
 0x139   :  { %2096 = vset.pattern.permute.xlu1 %v3443_v6  ;;  %1963 = vmatprep.subr.bf16.mxu0 %v1962_v44  ;;  %v672_v62 = vadd.f32 %v640_v47, %v476_v10  ;;  %v268_v47 = vmul.f32 %v2734_v22, %v3466_v37  ;;  %v287_v37 = vmul.f32 %v2734_v22, %v2750_v30  ;;  %v3475_v30 = vld [vmem:[#allocation9_spill] sm:$0xff] }
 0x13a   :  { %v1063_v57 = vadd.f32 %v1031_v20, %v867_v2  ;;  %597 = vperm.xlu1 %2096, %v3456_v25   ;;  %v1141_v9 = vsel %vm1077_vm3, %v1045_v49, %v1109_v27  ;;  %v869_v49 = vadd.f32 %v837_v3, %v673_v5  ;;  %v821_v5 = vmul.f32 %v2738_v36, %v2835_v19 }
 0x13b   :  { %v894_v28 = vpop.permute.xlu0 %893  ;;  %v1964_v42 = vpack.c.bf16 %v1141_v9, %v1140_v45  ;;  %v868_v59 = vadd.f32 %v836_v61, %v672_v62  ;;  %v79_v45 = vld [vmem:[%s3378_s2 + $0x58] sm:$0xff] }
 0x13c   :  { %vm1095_vm5 = vcmp.ge.f32.partialorder %v1063_v57, 0.0  ;;  %v1127_v48 = vmul.f32 0.2, %v1063_v57  ;;  %v1015_v38 = vmul.f32 %v2777_v23, %v894_v28 }
 0x13d   :  { %v2864_v21 = vpop.permute.xlu1 %581  ;;  %1965 = vmatpush3.bf16.msra.mxu0 %v1964_v42  ;;  %v3464_v42 = vld [vmem:[#allocation42_spill] sm:$0xff] }
 0x13e   :  { %v1047_v32 = vadd.f32 %v1015_v38, %v851_v11  ;;  %2097 = vset.pattern.permute.xlu1 %v3460_v17  ;;  %v1159_v60 = vsel %vm1095_vm5, %v1063_v57, %v1127_v48  ;;  %v3463_v11 = vld [vmem:[#allocation14_spill] sm:$0xff]  ;;  %v625_v3 = vmul.f32 %v2736_v0, %v3464_v42  ;;  %v3474_v42 = vld [vmem:[#allocation11_spill] sm:$0xff] }
 0x13f   :  { %v966_v54 = vpop.permute.xlu0 %965  ;;  %977 = vperm.xlu1 %2097, %v3462_v31   ;;  %v1966_v18 = vpack.c.bf16 %v1159_v60, %v1158_v14  ;;  %v269_v1 = vmul.f32 %v2734_v22, %v3463_v11  ;;  %v3465_v38 = vld [vmem:[#allocation6_spill] sm:$0xff]  ;;  %v3469_v14 = vld [vmem:[#allocation39_spill] sm:$0xff]  ;;  %v820_v31 = vmul.f32 %v2738_v36, %v2817_v50 }
 0x140   :  { %vm1079_vm7 = vcmp.ge.f32.partialorder %v1047_v32, 0.0  ;;  %v1111_v55 = vmul.f32 0.2, %v1047_v32  ;;  %v1033_v58 = vmul.f32 %v2777_v23, %v966_v54  ;;  %v460_v60 = vadd.f32 %v3469_v14, %v268_v47  ;;  %v3471_v50 = vld [vmem:[#allocation31_spill] sm:$0xff] }
 0x141   :  { %1967 = vmatprep.subr.bf16.mxu0 %v1966_v18  ;;  %v461_v10 = vadd.f32 %v3467_v29, %v269_v1  ;;  %v643_v47 = vmul.f32 %v2736_v0, %v2864_v21 }
 0x142   :  { %v1065_v2 = vadd.f32 %v1033_v58, %v869_v49  ;;  %v962_v7 = vpop.permute.xlu1 %961  ;;  %v1143_v44 = vsel %vm1079_vm7, %v1047_v32, %v1111_v55  ;;  %v624_v32 = vmul.f32 %v2736_v0, %v3468_v51 }
 0x143   :  { %v1032_v20 = vmul.f32 %v2777_v23, %v962_v7  ;;  %2098 = vset.pattern.permute.xlu1 %v3435_v24  ;;  %v1968_v27 = vpack.c.bf16 %v1143_v44, %v1142_v13  ;;  %v902_v48 = vpop.permute.xlu0 %901  ;;  %v657_v8 = vadd.f32 %v625_v3, %v461_v10  ;;  %v479_v10 = vadd.f32 %v2848_v43, %v287_v37  ;;  %v80_v43 = vld [vmem:[%s3378_s2 + $0x60] sm:$0xff] }
 0x144   :  { %348 = vperm.xlu1 %2098, %v78_v63   ;;  %v1129_v4 = vmul.f32 0.2, %v1065_v2  ;;  %vm1097_vm8 = vcmp.ge.f32.partialorder %v1065_v2, 0.0  ;;  %v1017_v61 = vmul.f32 %v2777_v23, %v902_v48  ;;  %v656_v49 = vadd.f32 %v624_v32, %v460_v60  ;;  %v3470_v63 = vld [vmem:[#allocation10_spill] sm:$0xff] }
 0x145   :  { %v1064_v53 = vadd.f32 %v1032_v20, %v868_v59  ;;  %1969 = vmatpush3.bf16.msra.mxu0 %v1968_v27  ;;  %v853_v18 = vadd.f32 %v821_v5, %v657_v8  ;;  %v644_v59 = vmul.f32 %v2736_v0, %v3471_v50  ;;  %v3472_v20 = vld [vmem:[#allocation27_spill] sm:$0xff]  ;;  %v675_v51 = vadd.f32 %v643_v47, %v479_v10 }
 0x146   :  { %v1161_v9 = vsel %vm1097_vm8, %v1065_v2, %v1129_v4  ;;  %v852_v58 = vadd.f32 %v820_v31, %v656_v49  ;;  %v81_v49 = vld [vmem:[%s3378_s2 + $0x68] sm:$0xff] }
 0x147   :  { %v1128_v34 = vmul.f32 0.2, %v1064_v53  ;;  %v2879_v57 = vpop.permute.xlu1 %328  ;;  %vm1096_vm9 = vcmp.ge.f32.partialorder %v1064_v53, 0.0  ;;  %v1049_v19 = vadd.f32 %v1017_v61, %v853_v18  ;;  %v974_v5 = vpop.permute.xlu0 %973 }
 0x148   :  { %353 = vperm.xlu1 %2098, %v79_v45   ;;  %v3473_v45 = vld [vmem:[#allocation18_spill] sm:$0xff]  ;;  %v1035_v14 = vmul.f32 %v2777_v23, %v974_v5 }
 0x149   :  { %v1160_v35 = vsel %vm1096_vm9, %v1064_v53, %v1128_v34  ;;  %v1113_v2 = vmul.f32 0.2, %v1049_v19  ;;  %vm1081_vm10 = vcmp.ge.f32.partialorder %v1049_v19, 0.0  ;;  %v840_v53 = vmul.f32 %v2738_v36, %v2746_v40 }
 0x14a   :  { %v1970_v16 = vpack.c.bf16 %v1161_v9, %v1160_v35 }
 0x14b   :  { %v2883_v28 = vpop.permute.xlu1 %333  ;;  %v1145_v4 = vsel %vm1081_vm10, %v1049_v19, %v1113_v2 }
 0x14c   :  { %2099 = vset.pattern.permute.xlu1 %v3443_v6  ;;  %1971 = vmatprep.subr.bf16.mxu0 %v1970_v16 }
 0x14d   :  { %533 = vperm.xlu1 %2099, %v3465_v38  }
 0x150   :  { %v2898_v54 = vpop.permute.xlu1 %517 }
 0x151   :  { %2100 = vset.pattern.permute.xlu1 %v3460_v17 }
 0x152   :  { %913 = vperm.xlu1 %2100, %v2419_v39  }
 0x155   :  { %v898_v55 = vpop.permute.xlu1 %897 }
 0x156   :  { %v1016_v62 = vmul.f32 %v2777_v23, %v898_v55  ;;  %2101 = vset.pattern.permute.xlu1 %v3435_v24 }
 0x157   :  { %242 = vperm.xlu1 %2101, %v3470_v63  }
 0x158   :  { %v1048_v7 = vadd.f32 %v1016_v62, %v852_v58  ;;  %v3476_v58 = vld [vmem:[#allocation16_spill] sm:$0xff] }
 0x159   :  { %v271_v62 = vmul.f32 %v2734_v22, %v3476_v58 }
 0x15a   :  { %v1112_v13 = vmul.f32 0.2, %v1048_v7  ;;  %v223_v44 = vpop.permute.xlu1 %222  ;;  %vm1080_vm11 = vcmp.ge.f32.partialorder %v1048_v7, 0.0 }
 0x15b   :  { %v288_v39 = vmul.f32 %v2734_v22, %v223_v44  ;;  %247 = vperm.xlu1 %2101, %v3472_v20   ;;  %v463_v50 = vadd.f32 %v2883_v28, %v271_v62  ;;  %v3483_v62 = vld [vmem:[#allocation13_spill] sm:$0xff] }
 0x15c   :  { %v1144_v27 = vsel %vm1080_vm11, %v1048_v7, %v1112_v13  ;;  %v627_v13 = vmul.f32 %v2736_v0, %v2898_v54 }
 0x15d   :  { %v480_v34 = vadd.f32 %v3473_v45, %v288_v39  ;;  %v1972_v35 = vpack.c.bf16 %v1145_v4, %v1144_v27  ;;  %v910_v39 = vpop.permute.xlu0 %909  ;;  %v3477_v27 = vld [vmem:[#allocation7_spill] sm:$0xff]  ;;  %v270_v4 = vmul.f32 %v2734_v22, %v2789_v56  ;;  %v3478_v45 = vld [vmem:[#allocation29_spill] sm:$0xff] }
 0x15e   :  { %v2914_v9 = vpop.permute.xlu1 %227  ;;  %v626_v54 = vmul.f32 %v2736_v0, %v3478_v45  ;;  %v1019_v28 = vmul.f32 %v2777_v23, %v910_v39 }
 0x15f   :  { %v676_v11 = vadd.f32 %v644_v59, %v480_v34  ;;  %2102 = vset.pattern.permute.xlu1 %v3455_v26  ;;  %1973 = vmatpush3.bf16.msra.mxu0 %v1972_v35  ;;  %v462_v34 = vadd.f32 %v2879_v57, %v270_v4  ;;  %v3479_v57 = vld [vmem:[#allocation12_spill] sm:$0xff] }
 0x160   :  { %793 = vperm.xlu1 %2102, %v3456_v25   ;;  %v97_v25 = vld [vmem:[%s3378_s2 + $0xe8] sm:$0xff] }
 0x161   :  { %v2918_v1 = vadd.f32 %v840_v53, %v676_v11  ;;  %v659_v53 = vadd.f32 %v627_v13, %v463_v50 }
 0x163   :  { %v778_v16 = vpop.permute.xlu1 %777 }
 0x164   :  { %2103 = vset.pattern.permute.xlu1 %v3435_v24 }
 0x165   :  { %162 = vperm.xlu1 %2103, %v3474_v42  }
 0x168   :  { %v2922_v3 = vpop.permute.xlu1 %142 }
 0x169   :  { %2104 = vset.pattern.permute.xlu1 %v3455_v26 }
 0x16a   :  { %725 = vperm.xlu1 %2104, %v2434_v41  }
 0x16d   :  { %v710_v40 = vpop.permute.xlu1 %709 }
 0x16e   :  { %729 = vperm.xlu1 %2104, %v3465_v38   ;;  %v839_v38 = vmul.f32 %v2738_v36, %v778_v16  ;;  %v822_v16 = vmul.f32 %v2738_v36, %v710_v40 }
 0x170   :  { %v871_v32 = vadd.f32 %v839_v38, %v675_v51 }
 0x171   :  { %v714_v48 = vpop.permute.xlu1 %713 }
 0x172   :  { %2105 = vset.pattern.permute.xlu1 %v3435_v24  ;;  %v1067_v21 = vadd.f32 %v1035_v14, %v871_v32  ;;  %v823_v59 = vmul.f32 %v2738_v36, %v714_v48  ;;  %v3480_v32 = vld [vmem:[#allocation33_spill] sm:$0xff]  ;;  %v3481_v14 = vld [vmem:[#allocation44_spill] sm:$0xff] }
 0x173   :  { %443 = vperm.xlu1 %2105, %v97_v25   ;;  %v658_v25 = vadd.f32 %v626_v54, %v462_v34  ;;  %v646_v40 = vmul.f32 %v2736_v0, %v3480_v32 }
 0x174   :  { %v1131_v31 = vmul.f32 0.2, %v1067_v21  ;;  %vm1099_vm12 = vcmp.ge.f32.partialorder %v1067_v21, 0.0  ;;  %v855_v35 = vadd.f32 %v823_v59, %v659_v53 }
 0x175   :  { %v854_v37 = vadd.f32 %v822_v16, %v658_v25  ;;  %v83_v16 = vld [vmem:[%s3378_s2 + $0x78] sm:$0xff]  ;;  %v3484_v25 = vld [vmem:[#allocation34_spill] sm:$0xff] }
 0x176   :  { %v2935_v29 = vpop.permute.xlu1 %423  ;;  %v1163_v7 = vsel %vm1099_vm12, %v1067_v21, %v1131_v31  ;;  %v1051_v48 = vadd.f32 %v1019_v28, %v855_v35 }
 0x177   :  { %2106 = vset.pattern.permute.xlu1 %v3443_v6 }
 0x178   :  { %605 = vperm.xlu1 %2106, %v3472_v20   ;;  %v1115_v10 = vmul.f32 0.2, %v1051_v48  ;;  %vm1083_vm14 = vcmp.ge.f32.partialorder %v1051_v48, 0.0 }
 0x17a   :  { %v1147_v21 = vsel %vm1083_vm14, %v1051_v48, %v1115_v10 }
 0x17b   :  { %v2942_v60 = vpop.permute.xlu1 %589 }
 0x17c   :  { %2107 = vset.pattern.permute.xlu1 %v3460_v17 }
 0x17d   :  { %985 = vperm.xlu1 %2107, %v3475_v30  }
 0x180   :  { %v970_v8 = vpop.permute.xlu1 %969 }
 0x181   :  { %v1034_v61 = vmul.f32 %v2777_v23, %v970_v8  ;;  %2108 = vset.pattern.permute.xlu1 %v3435_v24  ;;  %v3482_v8 = vld [vmem:[#allocation20_spill] sm:$0xff] }
 0x182   :  { %358 = vperm.xlu1 %2108, %v80_v43   ;;  %v842_v43 = vmul.f32 %v2738_v36, %v2757_v52 }
 0x183   :  { %v1066_v18 = vadd.f32 %v1034_v61, %v2759_v46 }
 0x185   :  { %v1130_v19 = vmul.f32 0.2, %v1066_v18  ;;  %v2955_v55 = vpop.permute.xlu1 %338  ;;  %vm1098_vm13 = vcmp.ge.f32.partialorder %v1066_v18, 0.0 }
 0x186   :  { %363 = vperm.xlu1 %2108, %v81_v49  }
 0x187   :  { %v1162_v2 = vsel %vm1098_vm13, %v1066_v18, %v1130_v19 }
 0x188   :  { %v1974_v44 = vpack.c.bf16 %v1163_v7, %v1162_v2  ;;  %v2132_v7 = vld [vmem:[%s3377_s1 + $0x68] sm:$0xff] }
 0x189   :  { %v2961_v46 = vpop.permute.xlu1 %343 }
 0x18a   :  { %2109 = vset.pattern.permute.xlu1 %v3443_v6  ;;  %1975 = vmatprep.subr.bf16.mxu0 %v1974_v44  ;;  %v289_v44 = vmul.f32 %v2734_v22, %v2914_v9 }
 0x18b   :  { %541 = vperm.xlu1 %2109, %v3477_v27   ;;  %v982_v27 = vpop.permute.xlu0 %981 }
 0x18c   :  { %v481_v59 = vadd.f32 %v2935_v29, %v289_v44  ;;  %v1037_v45 = vmul.f32 %v2777_v23, %v982_v27  ;;  %v82_v29 = vld [vmem:[%s3378_s2 + $0x70] sm:$0xff] }
 0x18d   :  { %v2135_v44 = vld [vmem:[%s3377_s1 + $0xf0] sm:$0xff] }
 0x18e   :  { %v2973_v11 = vpop.permute.xlu1 %525 }
 0x18f   :  { %2110 = vset.pattern.permute.xlu1 %v3460_v17 }
 0x190   :  { %921 = vperm.xlu1 %2110, %v2434_v41  }
 0x193   :  { %v906_v56 = vpop.permute.xlu1 %905 }
 0x194   :  { %v1018_v47 = vmul.f32 %v2777_v23, %v906_v56  ;;  %2111 = vset.pattern.permute.xlu1 %v3435_v24 }
 0x195   :  { %252 = vperm.xlu1 %2111, %v3479_v57  }
 0x196   :  { %v1050_v38 = vadd.f32 %v1018_v47, %v854_v37 }
 0x198   :  { %v1114_v5 = vmul.f32 0.2, %v1050_v38  ;;  %v233_v51 = vpop.permute.xlu1 %232  ;;  %vm1082_vm15 = vcmp.ge.f32.partialorder %v1050_v38, 0.0 }
 0x199   :  { %v290_v41 = vmul.f32 %v2734_v22, %v233_v51  ;;  %257 = vperm.xlu1 %2111, %v3481_v14  }
 0x19a   :  { %v1146_v30 = vsel %vm1082_vm15, %v1050_v38, %v1114_v5  ;;  %v3485_v38 = vld [vmem:[#allocation17_spill] sm:$0xff]  ;;  %v629_v5 = vmul.f32 %v2736_v0, %v2973_v11  ;;  %v272_v11 = vmul.f32 %v2734_v22, %v2922_v3 }
 0x19b   :  { %v482_v61 = vadd.f32 %v3482_v8, %v290_v41  ;;  %v1976_v31 = vpack.c.bf16 %v1147_v21, %v1146_v30  ;;  %v918_v21 = vpop.permute.xlu0 %917 }
 0x19c   :  { %v2988_v18 = vpop.permute.xlu1 %237 }
 0x19d   :  { %v678_v49 = vadd.f32 %v646_v40, %v482_v61  ;;  %2112 = vset.pattern.permute.xlu1 %v3455_v26  ;;  %1977 = vmatpush3.bf16.msra.mxu0 %v1976_v31  ;;  %v3486_v61 = vld [vmem:[#allocation32_spill] sm:$0xff] }
 0x19e   :  { %801 = vperm.xlu1 %2112, %v3472_v20   ;;  %v99_v20 = vld [vmem:[%s3378_s2 + $0xf8] sm:$0xff]  ;;  %v628_v31 = vmul.f32 %v2736_v0, %v3486_v61 }
 0x19f   :  { %v2992_v19 = vadd.f32 %v842_v43, %v678_v49  ;;  %v2133_v43 = vld [vmem:[%s3377_s1 + $0x78] sm:$0xff] }
 0x1a1   :  { %v786_v58 = vpop.permute.xlu1 %785 }
 0x1a2   :  { %2113 = vset.pattern.permute.xlu1 %v3435_v24  ;;  %v841_v39 = vmul.f32 %v2738_v36, %v786_v58  ;;  %v1021_v58 = vmul.f32 %v2777_v23, %v918_v21 }
 0x1a3   :  { %172 = vperm.xlu1 %2113, %v3483_v62  }
 0x1a6   :  { %v153_v2 = vpop.permute.xlu1 %152 }
 0x1a7   :  { %2114 = vset.pattern.permute.xlu1 %v3455_v26  ;;  %v274_v48 = vmul.f32 %v2734_v22, %v153_v2  ;;  %v2134_v2 = vld [vmem:[%s3377_s1 + $0x60] sm:$0xff] }
 0x1a8   :  { %733 = vperm.xlu1 %2114, %v3474_v42   ;;  %v645_v42 = vmul.f32 %v2736_v0, %v2942_v60 }
 0x1aa   :  { %v677_v4 = vadd.f32 %v645_v42, %v481_v59 }
 0x1ab   :  { %v718_v52 = vpop.permute.xlu1 %717 }
 0x1ac   :  { %737 = vperm.xlu1 %2114, %v2132_v7   ;;  %v873_v53 = vadd.f32 %v841_v39, %v677_v4  ;;  %v824_v62 = vmul.f32 %v2738_v36, %v718_v52 }
 0x1ae   :  { %v1069_v9 = vadd.f32 %v1037_v45, %v873_v53  ;;  %v3487_v45 = vld [vmem:[#allocation36_spill] sm:$0xff] }
 0x1af   :  { %v722_v13 = vpop.permute.xlu1 %721 }
 0x1b0   :  { %2116 = vset.pattern.permute.xlu1 %v3435_v24  ;;  %v1133_v35 = vmul.f32 0.2, %v1069_v9  ;;  %vm1101_vm0 = vcmp.ge.f32.partialorder %v1069_v9, 0.0  ;;  %v825_v30 = vmul.f32 %v2738_v36, %v722_v13 }
 0x1b1   :  { %453 = vperm.xlu1 %2116, %v99_v20  }
 0x1b2   :  { %v1165_v10 = vsel %vm1101_vm0, %v1069_v9, %v1133_v35  ;;  %v844_v9 = vmul.f32 %v2738_v36, %v2770_v33 }
 0x1b4   :  { %v3009_v50 = vpop.permute.xlu1 %433 }
 0x1b5   :  { %2117 = vset.pattern.permute.xlu1 %v3443_v6 }
 0x1b6   :  { %613 = vperm.xlu1 %2117, %v3481_v14  }
 0x1b9   :  { %v3016_v54 = vpop.permute.xlu1 %597 }
 0x1ba   :  { %2118 = vset.pattern.permute.xlu1 %v3460_v17 }
 0x1bb   :  { %993 = vperm.xlu1 %2118, %v3470_v63   ;;  %v630_v63 = vmul.f32 %v2736_v0, %v3484_v25  ;;  %v2136_v25 = vld [vmem:[%s3377_s1 + $0x70] sm:$0xff] }
 0x1be   :  { %v978_v60 = vpop.permute.xlu1 %977 }
 0x1bf   :  { %v1036_v34 = vmul.f32 %v2777_v23, %v978_v60  ;;  %2119 = vset.pattern.permute.xlu1 %v3435_v24 }
 0x1c0   :  { %368 = vperm.xlu1 %2119, %v82_v29   ;;  %v3488_v29 = vld [vmem:[#allocation22_spill] sm:$0xff] }
 0x1c1   :  { %v1068_v28 = vadd.f32 %v1036_v34, %v2918_v1  ;;  %v273_v1 = vmul.f32 %v2734_v22, %v3485_v38 }
 0x1c3   :  { %v1132_v56 = vmul.f32 0.2, %v1068_v28  ;;  %v349_v37 = vpop.permute.xlu1 %348  ;;  %vm1100_vm1 = vcmp.ge.f32.partialorder %v1068_v28, 0.0  ;;  %v465_v41 = vadd.f32 %v2961_v46, %v273_v1  ;;  %v464_v46 = vadd.f32 %v2955_v55, %v272_v11  ;;  %v990_v1 = vpop.permute.xlu0 %989 }
 0x1c4   :  { %v466_v47 = vadd.f32 %v349_v37, %v274_v48  ;;  %373 = vperm.xlu1 %2119, %v83_v16   ;;  %v647_v37 = vmul.f32 %v2736_v0, %v3016_v54 }
 0x1c5   :  { %v1164_v57 = vsel %vm1100_vm1, %v1068_v28, %v1132_v56  ;;  %v661_v8 = vadd.f32 %v629_v5, %v465_v41  ;;  %v660_v3 = vadd.f32 %v628_v31, %v464_v46  ;;  %v291_v56 = vmul.f32 %v2734_v22, %v2988_v18  ;;  %v3489_v31 = vld [vmem:[#allocation37_spill] sm:$0xff] }
 0x1c6   :  { %v3036_v51 = vadd.f32 %v630_v63, %v466_v47  ;;  %v1978_v32 = vpack.c.bf16 %v1165_v10, %v1164_v57  ;;  %v1173_v47 = vld [vmem:[%s3379_s3 + $0x8] sm:$0xff]  ;;  %v632_v46 = vmul.f32 %v2736_v0, %v3489_v31  ;;  %v1212_v31 = vld [vmem:[%s3380_s4 + $0x40] sm:$0xff] }
 0x1c7   :  { %v3038_v40 = vpop.permute.xlu1 %353  ;;  %v857_v49 = vadd.f32 %v825_v30, %v661_v8  ;;  %v856_v13 = vadd.f32 %v824_v62, %v660_v3  ;;  %1364 = vmatprep.mubr.f32.mxu0 %v1173_v47  ;;  %v483_v10 = vadd.f32 %v3009_v50, %v291_v56 }
 0x1c8   :  { %2121 = vset.pattern.permute.xlu1 %v3443_v6  ;;  %1979 = vmatprep.subr.bf16.mxu0 %v1978_v32  ;;  %v1039_v32 = vmul.f32 %v2777_v23, %v990_v1 }
 0x1c9   :  { %549 = vperm.xlu1 %2121, %v2133_v43   ;;  %v1053_v7 = vadd.f32 %v1021_v58, %v857_v49  ;;  %v679_v5 = vadd.f32 %v647_v37, %v483_v10  ;;  %v1205_v37 = vld [vmem:[%s3380_s4 + $0x8] sm:$0xff]  ;;  %v1206_v10 = vld [vmem:[%s3380_s4 + $0x10] sm:$0xff] }
 0x1cb   :  { %v1117_v42 = vmul.f32 0.2, %v1053_v7  ;;  %vm1085_vm2 = vcmp.ge.f32.partialorder %v1053_v7, 0.0 }
 0x1cc   :  { %v3052_v6 = vpop.permute.xlu1 %533 }
 0x1cd   :  { %2122 = vset.pattern.permute.xlu1 %v3460_v17  ;;  %v1149_v53 = vsel %vm1085_vm2, %v1053_v7, %v1117_v42  ;;  %v631_v7 = vmul.f32 %v2736_v0, %v3052_v6  ;;  %v926_v42 = vpop.permute.xlu0 %925 }
 0x1ce   :  { %929 = vperm.xlu1 %2122, %v2134_v2   ;;  %v3490_v2 = vld [vmem:[#allocation19_spill] sm:$0xff] }
 0x1cf   :  { %v275_v3 = vmul.f32 %v2734_v22, %v3490_v2 }
 0x1d1   :  { %v914_v20 = vpop.permute.xlu1 %913 }
 0x1d2   :  { %v1020_v55 = vmul.f32 %v2777_v23, %v914_v20  ;;  %2123 = vset.pattern.permute.xlu1 %v3455_v26  ;;  %v648_v26 = vmul.f32 %v2736_v0, %v3487_v45 }
 0x1d3   :  { %805 = vperm.xlu1 %2123, %v2135_v44  }
 0x1d4   :  { %v1052_v52 = vadd.f32 %v1020_v55, %v856_v13  ;;  %v467_v55 = vadd.f32 %v3038_v40, %v275_v3  ;;  %v3492_v3 = vld [vmem:[#allocation21_spill] sm:$0xff] }
 0x1d6   :  { %vm1084_vm3 = vcmp.ge.f32.partialorder %v1052_v52, 0.0  ;;  %v1116_v59 = vmul.f32 0.2, %v1052_v52  ;;  %v243_v39 = vpop.permute.xlu1 %242 }
 0x1d7   :  { %v292_v27 = vmul.f32 %v2734_v22, %v243_v39  ;;  %809 = vperm.xlu1 %2123, %v3481_v14   ;;  %v1023_v39 = vmul.f32 %v2777_v23, %v926_v42 }
 0x1d8   :  { %v1148_v4 = vsel %vm1084_vm3, %v1052_v52, %v1116_v59  ;;  %v663_v52 = vadd.f32 %v631_v7, %v467_v55  ;;  %v277_v7 = vmul.f32 %v2734_v22, %v3492_v3 }
 0x1d9   :  { %v484_v60 = vadd.f32 %v3488_v29, %v292_v27  ;;  %v1980_v34 = vpack.c.bf16 %v1149_v53, %v1148_v4 }
 0x1da   :  { %v248_v35 = vpop.permute.xlu1 %247 }
 0x1db   :  { %v680_v28 = vadd.f32 %v648_v26, %v484_v60  ;;  %745 = vperm.xlu1 %2123, %v2133_v43   ;;  %1981 = vmatpush3.bf16.msra.mxu0 %v1980_v34 }
 0x1dd   :  { %v3071_v16 = vadd.f32 %v844_v9, %v680_v28 }
 0x1df   :  { %2125 = vset.pattern.permute.xlu1 %v3460_v17  ;;  %v794_v14 = vpop.permute.xlu1 %793  ;;  %v293_v17 = vmul.f32 %v2734_v22, %v248_v35 }
 0x1e0   :  { %1001 = vperm.xlu1 %2125, %v2135_v44   ;;  %v843_v38 = vmul.f32 %v2738_v36, %v794_v14 }
 0x1e2   :  { %v875_v18 = vadd.f32 %v843_v38, %v679_v5  ;;  %v1207_v38 = vld [vmem:[%s3380_s4 + $0x18] sm:$0xff] }
 0x1e4   :  { %937 = vperm.xlu1 %2125, %v2136_v25   ;;  %v163_v63 = vpop.permute.xlu1 %162  ;;  %v1071_v41 = vadd.f32 %v1039_v32, %v875_v18 }
 0x1e5   :  { %v276_v50 = vmul.f32 %v2734_v22, %v163_v63 }
 0x1e6   :  { %vm1103_vm4 = vcmp.ge.f32.partialorder %v1071_v41, 0.0 }
 0x1e8   :  { %941 = vperm.xlu1 %2125, %v2133_v43   ;;  %v1135_v43 = vmul.f32 0.2, %v1071_v41 }
 0x1e9   :  { %v726_v33 = vpop.permute.xlu1 %725 }
 0x1ea   :  { %v1167_v62 = vsel %vm1103_vm4, %v1071_v41, %v1135_v43  ;;  %v826_v4 = vmul.f32 %v2738_v36, %v726_v33  ;;  %v1209_v41 = vld [vmem:[%s3380_s4 + $0x28] sm:$0xff]  ;;  %v1211_v43 = vld [vmem:[%s3380_s4 + $0x38] sm:$0xff] }
 0x1ec   :  { %2127 = vset.pattern.permute.xlu1 %v3435_v24  ;;  %v858_v45 = vadd.f32 %v826_v4, %v3036_v51  ;;  %v1215_v4 = vld [vmem:[%s3380_s4 + $0x58] sm:$0xff] }
 0x1ed   :  { %v730_v48 = vpop.permute.xlu1 %729  ;;  %1227 = vperm.xlu1 %2127, %v1205_v37  }
 0x1ee   :  { %v827_v44 = vmul.f32 %v2738_v36, %v730_v48 }
 0x1f0   :  { %v859_v59 = vadd.f32 %v827_v44, %v663_v52  ;;  %v830_v44 = vmul.f32 %v2738_v36, %v2791_v12 }
 0x1f1   :  { %1232 = vperm.xlu1 %2127, %v1206_v10  }
 0x1f2   :  { %v444_v57 = vpop.permute.xlu1 %443  ;;  %v1055_v6 = vadd.f32 %v1023_v39, %v859_v59  ;;  %v1214_v39 = vld [vmem:[%s3380_s4 + $0x50] sm:$0xff] }
 0x1f3   :  { %v3088_v24 = vadd.f32 %v444_v57, %v293_v17  ;;  %v1204_v17 = vld [vmem:[%s3380_s4] sm:$0xff]  ;;  %v998_v57 = vpop.permute.xlu0 %997 }
 0x1f4   :  { %v1119_v9 = vmul.f32 0.2, %v1055_v6  ;;  %vm1087_vm6 = vcmp.ge.f32.partialorder %v1055_v6, 0.0  ;;  %1222 = vperm.xlu0 %2126, %v1204_v17   ;;  %v1041_v18 = vmul.f32 %v2777_v23, %v998_v57  ;;  %v1502_v17 = vld [vmem:[%s3382_s6 + $0x8] sm:$0xff] }
 0x1f6   :  { %v1151_v35 = vsel %vm1087_vm6, %v1055_v6, %v1119_v9  ;;  %v1217_v9 = vld [vmem:[%s3380_s4 + $0x68] sm:$0xff] }
 0x1f7   :  { %v606_v54 = vpop.permute.xlu1 %605 }
 0x1f8   :  { %v649_v48 = vmul.f32 %v2736_v0, %v606_v54  ;;  %1237 = vperm.xlu0 %2126, %v1207_v38   ;;  %v1208_v54 = vld [vmem:[%s3380_s4 + $0x20] sm:$0xff] }
 0x1f9   :  { %1242 = vperm.xlu1 %2127, %v1208_v54  }
 0x1fa   :  { %v681_v1 = vadd.f32 %v649_v48, %v3088_v24  ;;  %v1210_v24 = vld [vmem:[%s3380_s4 + $0x30] sm:$0xff] }
 0x1fc   :  { %v986_v30 = vpop.permute.xlu1 %985  ;;  %1247 = vperm.xlu0 %2126, %v1209_v41  }
 0x1fd   :  { %v1038_v21 = vmul.f32 %v2777_v23, %v986_v30  ;;  %1252 = vperm.xlu1 %2127, %v1210_v24  }
 0x1ff   :  { %v1070_v11 = vadd.f32 %v1038_v21, %v2992_v19 }
 0x200   :  { %1257 = vperm.xlu0 %2126, %v1211_v43  }
 0x201   :  { %vm1102_vm5 = vcmp.ge.f32.partialorder %v1070_v11, 0.0  ;;  %v1134_v8 = vmul.f32 0.2, %v1070_v11  ;;  %v359_v61 = vpop.permute.xlu1 %358  ;;  %1262 = vperm.xlu1 %2127, %v1212_v31  }
 0x202   :  { %v468_v49 = vadd.f32 %v359_v61, %v276_v50 }
 0x203   :  { %v1166_v58 = vsel %vm1102_vm5, %v1070_v11, %v1134_v8 }
 0x204   :  { %v3100_v20 = vadd.f32 %v632_v46, %v468_v49  ;;  %v1982_v19 = vpack.c.bf16 %v1167_v62, %v1166_v58  ;;  %v1213_v46 = vld [vmem:[%s3380_s4 + $0x48] sm:$0xff]  ;;  %v3491_v62 = vld [vmem:[#allocation40_spill] sm:$0xff] }
 0x205   :  { %v3102_v13 = vpop.permute.xlu1 %363  ;;  %v634_v2 = vmul.f32 %v2736_v0, %v3491_v62  ;;  %1267 = vperm.xlu0 %2126, %v1213_v46   ;;  %1272 = vperm.xlu1 %2127, %v1214_v39   ;;  %v1507_v46 = vld [vmem:[%s3382_s6 + $0x30] sm:$0xff] }
 0x206   :  { %1983 = vmatprep.subr.bf16.mxu0 %v1982_v19 }
 0x209   :  { %1277 = vperm.xlu0 %2126, %v1215_v4  }
 0x20a   :  { %v3107_v27 = vpop.permute.xlu1 %541 }
 0x20b   :  { %v633_v42 = vmul.f32 %v2736_v0, %v3107_v27 }
 0x20d   :  { %1287 = vperm.xlu0 %2126, %v1217_v9  }
 0x20f   :  { %v922_v53 = vpop.permute.xlu1 %921 }
 0x210   :  { %v1022_v26 = vmul.f32 %v2777_v23, %v922_v53  ;;  %v469_v53 = vadd.f32 %v3102_v13, %v277_v7 }
 0x212   :  { %v1054_v40 = vadd.f32 %v1022_v26, %v858_v45  ;;  %v665_v27 = vadd.f32 %v633_v42, %v469_v53  ;;  %v1216_v26 = vld [vmem:[%s3380_s4 + $0x60] sm:$0xff] }
 0x213   :  { %1282 = vperm.xlu1 %2127, %v1216_v26  }
 0x214   :  { %vm1086_vm7 = vcmp.ge.f32.partialorder %v1054_v40, 0.0  ;;  %v1118_v29 = vmul.f32 0.2, %v1054_v40  ;;  %v3112_v60 = vpop.permute.xlu1 %252 }
 0x216   :  { %v1150_v34 = vsel %vm1086_vm7, %v1054_v40, %v1118_v29  ;;  %v934_v40 = vpop.permute.xlu0 %933 }
 0x217   :  { %v1984_v28 = vpack.c.bf16 %v1151_v35, %v1150_v34  ;;  %v1025_v29 = vmul.f32 %v2777_v23, %v934_v40 }
 0x218   :  { %v3114_v14 = vpop.permute.xlu1 %257 }
 0x219   :  { %1985 = vmatpush3.bf16.msra.mxu0 %v1984_v28  ;;  %v1218_v28 = vld [vmem:[%s3380_s4 + $0x70] sm:$0xff] }
 0x21a   :  { %1292 = vperm.xlu1 %2127, %v1218_v28  }
 0x21d   :  { %v802_v25 = vpop.permute.xlu1 %801 }
 0x21e   :  { %v845_v47 = vmul.f32 %v2738_v36, %v802_v25  ;;  %v1219_v25 = vld [vmem:[%s3380_s4 + $0x78] sm:$0xff] }
 0x21f   :  { %1297 = vperm.xlu0 %2126, %v1219_v25  }
 0x220   :  { %v877_v5 = vadd.f32 %v845_v47, %v681_v1  ;;  %v1504_v1 = vld [vmem:[%s3382_s6 + $0x18] sm:$0xff] }
 0x222   :  { %v173_v63 = vpop.permute.xlu1 %172  ;;  %v1073_v30 = vadd.f32 %v1041_v18, %v877_v5  ;;  %v295_v5 = vmul.f32 %v2734_v22, %v3114_v14  ;;  %v1506_v14 = vld [vmem:[%s3382_s6 + $0x28] sm:$0xff] }
 0x223   :  { %v278_v61 = vmul.f32 %v2734_v22, %v173_v63  ;;  %1516 = vperm.xlu0 %2126, %v1502_v17   ;;  %v1177_v17 = vld [vmem:[%s3379_s3 + $0x28] sm:$0xff] }
 0x224   :  { %v1137_v50 = vmul.f32 0.2, %v1073_v30  ;;  %vm1105_vm8 = vcmp.ge.f32.partialorder %v1073_v30, 0.0 }
 0x226   :  { %v1169_v55 = vsel %vm1105_vm8, %v1073_v30, %v1137_v50 }
 0x227   :  { %v3116_v33 = vpop.permute.xlu1 %733  ;;  %1526 = vperm.xlu0 %2126, %v1504_v1   ;;  %v1183_v1 = vld [vmem:[%s3379_s3 + $0x58] sm:$0xff] }
 0x228   :  { %v828_v35 = vmul.f32 %v2738_v36, %v3116_v33  ;;  %v1501_v33 = vld [vmem:[%s3382_s6] sm:$0xff] }
 0x229   :  { %1511 = vperm.xlu1 %2127, %v1501_v33   ;;  %v1175_v33 = vld [vmem:[%s3379_s3 + $0x18] sm:$0xff] }
 0x22a   :  { %v860_v48 = vadd.f32 %v828_v35, %v3100_v20  ;;  %v1503_v20 = vld [vmem:[%s3382_s6 + $0x10] sm:$0xff] }
 0x22b   :  { %v738_v51 = vpop.permute.xlu1 %737  ;;  %1536 = vperm.xlu0 %2126, %v1506_v14   ;;  %v1193_v14 = vld [vmem:[%s3379_s3 + $0xa8] sm:$0xff] }
 0x22c   :  { %v829_v45 = vmul.f32 %v2738_v36, %v738_v51 }
 0x22d   :  { %1521 = vperm.xlu1 %2127, %v1503_v20   ;;  %v1180_v20 = vld [vmem:[%s3379_s3 + $0x40] sm:$0xff] }
 0x22e   :  { %v861_v13 = vadd.f32 %v829_v45, %v665_v27 }
 0x230   :  { %v3119_v56 = vpop.permute.xlu1 %453  ;;  %v1057_v63 = vadd.f32 %v1025_v29, %v861_v13 }
 0x231   :  { %v487_v24 = vadd.f32 %v3119_v56, %v295_v5  ;;  %v1182_v5 = vld [vmem:[%s3379_s3 + $0x50] sm:$0xff] }
 0x232   :  { %v1121_v47 = vmul.f32 0.2, %v1057_v63  ;;  %vm1089_vm10 = vcmp.ge.f32.partialorder %v1057_v63, 0.0 }
 0x234   :  { %v1153_v41 = vsel %vm1089_vm10, %v1057_v63, %v1121_v47  ;;  %v1176_v47 = vld [vmem:[%s3379_s3 + $0x20] sm:$0xff] }
 0x235   :  { %v3136_v32 = vpop.permute.xlu1 %613 }
 0x236   :  { %v651_v18 = vmul.f32 %v2736_v0, %v3136_v32 }
 0x238   :  { %v683_v50 = vadd.f32 %v651_v18, %v487_v24  ;;  %v1185_v18 = vld [vmem:[%s3379_s3 + $0x68] sm:$0xff]  ;;  %v1188_v24 = vld [vmem:[%s3379_s3 + $0x80] sm:$0xff] }
 0x23a   :  { %v994_v21 = vpop.permute.xlu1 %993 }
 0x23b   :  { %v1040_v11 = vmul.f32 %v2777_v23, %v994_v21  ;;  %v294_v21 = vmul.f32 %v2734_v22, %v3112_v60 }
 0x23d   :  { %v1072_v8 = vadd.f32 %v1040_v11, %v3071_v16  ;;  %v1505_v11 = vld [vmem:[%s3382_s6 + $0x20] sm:$0xff] }
 0x23e   :  { %1531 = vperm.xlu1 %2127, %v1505_v11   ;;  %v1190_v11 = vld [vmem:[%s3379_s3 + $0x90] sm:$0xff] }
 0x23f   :  { %vm1104_vm9 = vcmp.ge.f32.partialorder %v1072_v8, 0.0  ;;  %v1136_v49 = vmul.f32 0.2, %v1072_v8  ;;  %v369_v58 = vpop.permute.xlu1 %368 }
 0x240   :  { %v470_v16 = vadd.f32 %v369_v58, %v278_v61  ;;  %v3493_v61 = vld [vmem:[#allocation24_spill] sm:$0xff]  ;;  %v3494_v58 = vld [vmem:[#allocation38_spill] sm:$0xff] }
 0x241   :  { %v1168_v19 = vsel %vm1104_vm9, %v1072_v8, %v1136_v49  ;;  %v1006_v8 = vpop.permute.xlu0 %1005  ;;  %v486_v60 = vadd.f32 %v3493_v61, %v294_v21  ;;  %v1508_v49 = vld [vmem:[%s3382_s6 + $0x38] sm:$0xff]  ;;  %v650_v62 = vmul.f32 %v2736_v0, %v3494_v58  ;;  %v1189_v21 = vld [vmem:[%s3379_s3 + $0x88] sm:$0xff] }
 0x242   :  { %v666_v52 = vadd.f32 %v634_v2, %v470_v16  ;;  %v1986_v59 = vpack.c.bf16 %v1169_v55, %v1168_v19  ;;  %v1043_v2 = vmul.f32 %v2777_v23, %v1006_v8  ;;  %1541 = vperm.xlu1 %2127, %v1507_v46   ;;  %1546 = vperm.xlu0 %2126, %v1508_v49   ;;  %v1679_v19 = vld [vmem:[#allocation2] sm:$0x1]  ;;  %v1194_v8 = vld [vmem:[%s3379_s3 + $0xb0] sm:$0xff]  ;;  %v1197_v61 = vld [vmem:[%s3379_s3 + $0xc8] sm:$0xff] }
 0x243   :  { %v3173_v6 = vpop.permute.xlu1 %373  ;;  %v682_v3 = vadd.f32 %v650_v62, %v486_v60  ;;  %v1196_v60 = vld [vmem:[%s3379_s3 + $0xc0] sm:$0xff]  ;;  %v1201_v46 = vld [vmem:[%s3379_s3 + $0xe8] sm:$0xff]  ;;  %v1203_v58 = vld [vmem:[%s3379_s3 + $0xf8] sm:$0xff] }
 0x244   :  { %1987 = vmatprep.subr.bf16.mxu0 %v1986_v59  ;;  %v3177_v12 = vadd.f32 %v830_v44, %v666_v52  ;;  %v3495_v52 = vld [vmem:[#allocation23_spill] sm:$0xff]  ;;  %v1200_v49 = vld [vmem:[%s3379_s3 + $0xe0] sm:$0xff] }
 0x245   :  { %v279_v59 = vmul.f32 %v2734_v22, %v3495_v52  ;;  %v1202_v62 = vld [vmem:[%s3379_s3 + $0xf0] sm:$0xff] }
 0x246   :  { %1682 = vperm.xlu1 %2127, %v1679_v19  }
 0x247   :  { %v471_v45 = vadd.f32 %v3173_v6, %v279_v59 }
 0x248   :  { %v550_v34 = vpop.permute.xlu1 %549 }
 0x249   :  { %v635_v39 = vmul.f32 %v2736_v0, %v550_v34 }
 0x24b   :  { %v667_v29 = vadd.f32 %v635_v39, %v471_v45 }
 0x24d   :  { %v930_v51 = vpop.permute.xlu1 %929 }
 0x24e   :  { %v1024_v37 = vmul.f32 %v2777_v23, %v930_v51 }
 0x250   :  { %v1056_v57 = vadd.f32 %v1024_v37, %v860_v48 }
 0x252   :  { %vm1088_vm11 = vcmp.ge.f32.partialorder %v1056_v57, 0.0  ;;  %v1120_v10 = vmul.f32 0.2, %v1056_v57  ;;  %v806_v38 = vpop.permute.xlu1 %805 }
 0x253   :  { %v846_v16 = vmul.f32 %v2738_v36, %v806_v38  ;;  %v1181_v38 = vld [vmem:[%s3379_s3 + $0x48] sm:$0xff] }
 0x254   :  { %v1152_v54 = vsel %vm1088_vm11, %v1056_v57, %v1120_v10  ;;  %v1179_v57 = vld [vmem:[%s3379_s3 + $0x38] sm:$0xff]  ;;  %v1178_v10 = vld [vmem:[%s3379_s3 + $0x30] sm:$0xff] }
 0x255   :  { %v1988_v30 = vpack.c.bf16 %v1153_v41, %v1152_v54  ;;  %v878_v44 = vadd.f32 %v846_v16, %v682_v3  ;;  %v1184_v54 = vld [vmem:[%s3379_s3 + $0x60] sm:$0xff]  ;;  %v1187_v41 = vld [vmem:[%s3379_s3 + $0x78] sm:$0xff] }
 0x256   :  { %v810_v43 = vpop.permute.xlu1 %809 }
 0x257   :  { %v847_v32 = vmul.f32 %v2738_v36, %v810_v43  ;;  %1989 = vmatpush3.bf16.msra.mxu0 %v1988_v30  ;;  %v1186_v30 = vld [vmem:[%s3379_s3 + $0x70] sm:$0xff]  ;;  %v1191_v43 = vld [vmem:[%s3379_s3 + $0x98] sm:$0xff] }
 0x259   :  { %v879_v31 = vadd.f32 %v847_v32, %v683_v50  ;;  %v1192_v32 = vld [vmem:[%s3379_s3 + $0xa0] sm:$0xff]  ;;  %v1195_v50 = vld [vmem:[%s3379_s3 + $0xb8] sm:$0xff] }
 0x25a   :  { %v746_v56 = vpop.permute.xlu1 %745 }
 0x25b   :  { %v1075_v7 = vadd.f32 %v1043_v2, %v879_v31  ;;  %v831_v26 = vmul.f32 %v2738_v36, %v746_v56  ;;  %v1199_v31 = vld [vmem:[%s3379_s3 + $0xd8] sm:$0xff]  ;;  %v1198_v56 = vld [vmem:[%s3379_s3 + $0xd0] sm:$0xff]  ;;  %v1493_v2 = vld [vmem:[%s3381_s5] sm:$0xff] }
 0x25c   :  { %1931 = vmatprep.mubr.f32.mxu1 %v1493_v2 }
 0x25d   :  { %v1139_v4 = vmul.f32 0.2, %v1075_v7  ;;  %vm1107_vm12 = vcmp.ge.f32.partialorder %v1075_v7, 0.0  ;;  %v863_v0 = vadd.f32 %v831_v26, %v667_v29 }
 0x25f   :  { %v1002_v55 = vpop.permute.xlu1 %1001  ;;  %v1171_v22 = vsel %vm1107_vm12, %v1075_v7, %v1139_v4 }
 0x260   :  { %v1042_v42 = vmul.f32 %v2777_v23, %v1002_v55 }
 0x262   :  { %v1074_v53 = vadd.f32 %v1042_v42, %v878_v44 }
 0x263   :  { %v938_v27 = vpop.permute.xlu1 %937 }
 0x264   :  { %vm1106_vm13 = vcmp.ge.f32.partialorder %v1074_v53, 0.0  ;;  %v1138_v9 = vmul.f32 0.2, %v1074_v53  ;;  %v1026_v40 = vmul.f32 %v2777_v23, %v938_v27 }
 0x266   :  { %v1058_v13 = vadd.f32 %v1026_v40, %v3177_v12  ;;  %v1170_v35 = vsel %vm1106_vm13, %v1074_v53, %v1138_v9  ;;  %v1172_v12 = vld [vmem:[%s3379_s3] sm:$0xff] }
 0x267   :  { %v942_v28 = vpop.permute.xlu1 %941  ;;  %v1990_v25 = vpack.c.bf16 %v1171_v22, %v1170_v35 }
 0x268   :  { %v1027_v34 = vmul.f32 %v2777_v23, %v942_v28  ;;  %v1122_v6 = vmul.f32 0.2, %v1058_v13  ;;  %vm1090_vm14 = vcmp.ge.f32.partialorder %v1058_v13, 0.0  ;;  %v1174_v23 = vld [vmem:[%s3379_s3 + $0x10] sm:$0xff] }
 0x269   :  { %1991 = vmatprep.subr.bf16.mxu0 %v1990_v25 }
 0x26a   :  { %v1059_v63 = vadd.f32 %v1027_v34, %v863_v0  ;;  %v1154_v51 = vsel %vm1090_vm14, %v1058_v13, %v1122_v6 }
 0x26c   :  { %vm1091_vm15 = vcmp.ge.f32.partialorder %v1059_v63, 0.0  ;;  %v1123_v36 = vmul.f32 0.2, %v1059_v63  ;;  %v1228_v42 = vpop.permute.xlu1 %1227 }
 0x26e   :  { %v1155_v48 = vsel %vm1091_vm15, %v1059_v63, %v1123_v36 }
 0x26f   :  { %v1992_v37 = vpack.c.bf16 %v1155_v48, %v1154_v51 }
 0x270   :  { %v1233_v9 = vpop.permute.xlu1 %1232 }
 0x271   :  { %1993 = vmatpush3.bf16.msra.mxu0 %v1992_v37 }
 0x273   :  { %v1223_v19 = vpop.permute.xlu0 %1222 }
 0x274   :  { %1365 = vmatmul.mubr.f32.vlgmr.msra.gmra.mrb[0].mxu0 %v1172_v12 }
 0x275   :  { %1369 = vmatprep.mubr.f32.mxu0 %v1175_v33 }
 0x277   :  { %v1238_v0 = vpop.permute.xlu0 %1237 }
 0x278   :  { %1370 = vmatmul.mubr.f32.gmra.mrb[2].mxu0 %v1174_v23  ;;  %v1243_v37 = vpop.permute.xlu1 %1242 }
 0x279   :  { %1374 = vmatprep.mubr.f32.mxu0 %v1177_v17 }
 0x27c   :  { %1375 = vmatmul.mubr.f32.gmra.mrb[4].mxu0 %v1176_v47 }
 0x27d   :  { %1379 = vmatprep.mubr.f32.mxu0 %v1179_v57 }
 0x280   :  { %1380 = vmatmul.mubr.f32.gmra.mrb[6].mxu0 %v1178_v10 }
 0x281   :  { %1384 = vmatprep.mubr.f32.mxu0 %v1181_v38  ;;  %v1248_v38 = vpop.permute.xlu0 %1247 }
 0x284   :  { %1385 = vmatmul.mubr.f32.gmra.mrb[8].mxu0 %v1180_v20 }
 0x285   :  { %1389 = vmatprep.mubr.f32.mxu0 %v1183_v1 }
 0x288   :  { %1390 = vmatmul.mubr.f32.gmra.mrb[10].mxu0 %v1182_v5 }
 0x289   :  { %1394 = vmatprep.mubr.f32.mxu0 %v1185_v18 }
 0x28c   :  { %1395 = vmatmul.mubr.f32.gmra.mrb[12].mxu0 %v1184_v54 }
 0x28d   :  { %1399 = vmatprep.mubr.f32.mxu0 %v1187_v41 }
 0x290   :  { %1400 = vmatmul.mubr.f32.gmra.mrb[14].mxu0 %v1186_v30  ;;  %v1253_v30 = vpop.permute.xlu1 %1252 }
 0x291   :  { %1404 = vmatprep.mubr.f32.mxu0 %v1189_v21 }
 0x294   :  { %1405 = vmatmul.mubr.f32.gmra.mrb[16].mxu0 %v1188_v24 }
 0x295   :  { %1409 = vmatprep.mubr.f32.mxu0 %v1191_v43 }
 0x298   :  { %1410 = vmatmul.mubr.f32.gmra.mrb[18].mxu0 %v1190_v11 }
 0x299   :  { %1414 = vmatprep.mubr.f32.mxu0 %v1193_v14 }
 0x29c   :  { %1415 = vmatmul.mubr.f32.gmra.mrb[20].mxu0 %v1192_v32 }
 0x29d   :  { %1419 = vmatprep.mubr.f32.mxu0 %v1195_v50 }
 0x2a0   :  { %1420 = vmatmul.mubr.f32.gmra.mrb[22].mxu0 %v1194_v8  ;;  %v1258_v8 = vpop.permute.xlu0 %1257 }
 0x2a1   :  { %1424 = vmatprep.mubr.f32.mxu0 %v1197_v61 }
 0x2a4   :  { %1425 = vmatmul.mubr.f32.gmra.mrb[24].mxu0 %v1196_v60 }
 0x2a5   :  { %1429 = vmatprep.mubr.f32.mxu0 %v1199_v31 }
 0x2a8   :  { %1430 = vmatmul.mubr.f32.gmra.mrb[26].mxu0 %v1198_v56 }
 0x2a9   :  { %1434 = vmatprep.mubr.f32.mxu0 %v1201_v46 }
 0x2ac   :  { %1435 = vmatmul.mubr.f32.gmra.mrb[28].mxu0 %v1200_v49 }
 0x2ad   :  { %1439 = vmatprep.mubr.f32.mxu0 %v1203_v58  ;;  %v1263_v58 = vpop.permute.xlu1 %1262 }
 0x2b0   :  { %1440 = vmatmul.mubr.f32.gmra.mrb[30].mxu0 %v1202_v62 }
 0x347   :  { %v1818_v16 = vpop.f32.mrb[0].mxu0 }
 0x348   :  { %v1819_v3 = vpop.f32.mrb[1].mxu0 }
 0x349   :  { %v1820_v7 = vadd.f32 %v1819_v3, %v1818_v16 }
 0x34b   :  { %v1367_v55 = vadd.f32 %v1820_v7, %v1223_v19  ;;  %v1821_v44 = vpop.f32.mrb[2].mxu0 }
 0x34c   :  { %v1822_v52 = vpop.f32.mrb[3].mxu0 }
 0x34d   :  { %v1823_v59 = vadd.f32 %v1822_v52, %v1821_v44  ;;  %v1461_v53 = vmul.f32 0.2, %v1367_v55  ;;  %vm1445_vm0 = vcmp.ge.f32.partialorder %v1367_v55, 0.0  ;;  %v1268_v44 = vpop.permute.xlu0 %1267 }
 0x34f   :  { %v1372_v39 = vadd.f32 %v1823_v59, %v1228_v42  ;;  %v1824_v4 = vpop.f32.mrb[4].mxu0  ;;  %v1477_v13 = vsel %vm1445_vm0, %v1367_v55, %v1461_v53  ;;  %vm2166_vm0 = vmmov 0  }
 0x350   :  { %v1825_v45 = vpop.f32.mrb[5].mxu0 }
 0x351   :  { %v1826_v27 = vadd.f32 %v1825_v45, %v1824_v4  ;;  %vm1446_vm1 = vcmp.ge.f32.partialorder %v1372_v39, 0.0  ;;  %v1462_v26 = vmul.f32 0.2, %v1372_v39  ;;  %v1273_v45 = vpop.permute.xlu1 %1272 }
 0x353   :  { %v1377_v40 = vadd.f32 %v1826_v27, %v1233_v9  ;;  %v1827_v29 = vpop.f32.mrb[6].mxu0  ;;  %v1478_v35 = vsel %vm1446_vm1, %v1372_v39, %v1462_v26 }
 0x354   :  { %v1828_v22 = vpop.f32.mrb[7].mxu0  ;;  %v1994_v28 = vpack.c.bf16 %v1478_v35, %v1477_v13 }
 0x355   :  { %v1829_v25 = vadd.f32 %v1828_v22, %v1827_v29  ;;  %v1463_v34 = vmul.f32 0.2, %v1377_v40  ;;  %vm1447_vm2 = vcmp.ge.f32.partialorder %v1377_v40, 0.0  ;;  %v1278_v22 = vpop.permute.xlu0 %1277 }
 0x356   :  { %1995 = vmatprep.subr.bf16.mxu1 %v1994_v28 }
 0x357   :  { %v1382_v6 = vadd.f32 %v1829_v25, %v1238_v0  ;;  %v1830_v63 = vpop.f32.mrb[8].mxu0  ;;  %1997 = vmatpush3.bf16.msra.mxu1 %v1994_v28  ;;  %v1479_v23 = vsel %vm1447_vm2, %v1377_v40, %v1463_v34 }
 0x358   :  { %v1831_v36 = vpop.f32.mrb[9].mxu0 }
 0x359   :  { %vm1448_vm3 = vcmp.ge.f32.partialorder %v1382_v6, 0.0  ;;  %v1464_v51 = vmul.f32 0.2, %v1382_v6  ;;  %v1832_v48 = vadd.f32 %v1831_v36, %v1830_v63  ;;  %v1283_v36 = vpop.permute.xlu1 %1282 }
 0x35b   :  { %v1387_v12 = vadd.f32 %v1832_v48, %v1243_v37  ;;  %v1833_v33 = vpop.f32.mrb[10].mxu0  ;;  %v1480_v17 = vsel %vm1448_vm3, %v1382_v6, %v1464_v51 }
 0x35c   :  { %v1834_v47 = vpop.f32.mrb[11].mxu0  ;;  %v1998_v57 = vpack.c.bf16 %v1480_v17, %v1479_v23 }
 0x35d   :  { %v1835_v10 = vadd.f32 %v1834_v47, %v1833_v33  ;;  %v1465_v20 = vmul.f32 0.2, %v1387_v12  ;;  %vm1449_vm4 = vcmp.ge.f32.partialorder %v1387_v12, 0.0  ;;  %v1288_v47 = vpop.permute.xlu0 %1287 }
 0x35e   :  { %1999 = vmatprep.subr.bf16.mxu1 %v1998_v57 }
 0x35f   :  { %v1392_v1 = vadd.f32 %v1835_v10, %v1248_v38  ;;  %v1836_v5 = vpop.f32.mrb[12].mxu0  ;;  %2001 = vmatpush3.bf16.msra.mxu1 %v1998_v57  ;;  %v1481_v43 = vsel %vm1449_vm4, %v1387_v12, %v1465_v20 }
 0x360   :  { %v1837_v18 = vpop.f32.mrb[13].mxu0 }
 0x361   :  { %vm1450_vm5 = vcmp.ge.f32.partialorder %v1392_v1, 0.0  ;;  %v1466_v54 = vmul.f32 0.2, %v1392_v1  ;;  %v1838_v41 = vadd.f32 %v1837_v18, %v1836_v5  ;;  %v1293_v18 = vpop.permute.xlu1 %1292 }
 0x363   :  { %v1397_v21 = vadd.f32 %v1838_v41, %v1253_v30  ;;  %v1839_v24 = vpop.f32.mrb[14].mxu0  ;;  %v1482_v11 = vsel %vm1450_vm5, %v1392_v1, %v1466_v54 }
 0x364   :  { %v1840_v14 = vpop.f32.mrb[15].mxu0  ;;  %v2002_v32 = vpack.c.bf16 %v1482_v11, %v1481_v43 }
 0x365   :  { %v1841_v50 = vadd.f32 %v1840_v14, %v1839_v24  ;;  %v1467_v61 = vmul.f32 0.2, %v1397_v21  ;;  %vm1451_vm6 = vcmp.ge.f32.partialorder %v1397_v21, 0.0  ;;  %v1298_v14 = vpop.permute.xlu0 %1297 }
 0x366   :  { %2003 = vmatprep.subr.bf16.mxu1 %v2002_v32 }
 0x367   :  { %v1402_v60 = vadd.f32 %v1841_v50, %v1258_v8  ;;  %v1842_v31 = vpop.f32.mrb[16].mxu0  ;;  %2005 = vmatpush3.bf16.msra.mxu1 %v2002_v32  ;;  %v1483_v16 = vsel %vm1451_vm6, %v1397_v21, %v1467_v61 }
 0x368   :  { %v1843_v56 = vpop.f32.mrb[17].mxu0 }
 0x369   :  { %vm1452_vm7 = vcmp.ge.f32.partialorder %v1402_v60, 0.0  ;;  %v1468_v46 = vmul.f32 0.2, %v1402_v60  ;;  %v1844_v49 = vadd.f32 %v1843_v56, %v1842_v31  ;;  %v1494_v56 = vld [vmem:[%s3381_s5 + $0x8] sm:$0xff] }
 0x36b   :  { %v1407_v62 = vadd.f32 %v1844_v49, %v1263_v58  ;;  %v1845_v2 = vpop.f32.mrb[18].mxu0  ;;  %v1484_v3 = vsel %vm1452_vm7, %v1402_v60, %v1468_v46  ;;  %v1495_v46 = vld [vmem:[%s3381_s5 + $0x10] sm:$0xff]  ;;  %v1496_v49 = vld [vmem:[%s3381_s5 + $0x18] sm:$0xff]  ;;  %v1497_v58 = vld [vmem:[%s3381_s5 + $0x20] sm:$0xff] }
 0x36c   :  { %v1846_v7 = vpop.f32.mrb[19].mxu0  ;;  %v2006_v19 = vpack.c.bf16 %v1484_v3, %v1483_v16  ;;  %v1500_v16 = vld [vmem:[%s3381_s5 + $0x38] sm:$0xff]  ;;  %v2165_v3 = vmov 0.0|0.0  }
 0x36d   :  { %v1847_v55 = vadd.f32 %v1846_v7, %v1845_v2  ;;  %v1469_v42 = vmul.f32 0.2, %v1407_v62  ;;  %vm1453_vm8 = vcmp.ge.f32.partialorder %v1407_v62, 0.0  ;;  %v1499_v2 = vld [vmem:[%s3381_s5 + $0x30] sm:$0xff]  ;;  %v2167_v7 = vmov 0.0  }
 0x36e   :  { %2007 = vmatprep.subr.bf16.mxu1 %v2006_v19 }
 0x36f   :  { %v1412_v52 = vadd.f32 %v1847_v55, %v1268_v44  ;;  %v1848_v59 = vpop.f32.mrb[20].mxu0  ;;  %2009 = vmatpush3.bf16.msra.mxu1 %v2006_v19  ;;  %v1485_v9 = vsel %vm1453_vm8, %v1407_v62, %v1469_v42  ;;  %v1498_v62 = vld [vmem:[%s3381_s5 + $0x28] sm:$0xff]  ;;  %v1517_v19 = vpop.permute.xlu0 %1516 }
 0x370   :  { %v1849_v39 = vpop.f32.mrb[21].mxu0  ;;  %v1512_v55 = vpop.permute.xlu1 %1511 }
 0x371   :  { %vm1454_vm9 = vcmp.ge.f32.partialorder %v1412_v52, 0.0  ;;  %v1470_v4 = vmul.f32 0.2, %v1412_v52  ;;  %v1850_v53 = vadd.f32 %v1849_v39, %v1848_v59 }
 0x373   :  { %v1417_v27 = vadd.f32 %v1850_v53, %v1273_v45  ;;  %v1851_v26 = vpop.f32.mrb[22].mxu0  ;;  %v1486_v40 = vsel %vm1454_vm9, %v1412_v52, %v1470_v4  ;;  %v1527_v44 = vpop.permute.xlu0 %1526  ;;  %vm1689_vm9 = vcmask 523264  }
 0x374   :  { %v1852_v29 = vpop.f32.mrb[23].mxu0  ;;  %v2010_v13 = vpack.c.bf16 %v1486_v40, %v1485_v9  ;;  %v1522_v52 = vpop.permute.xlu1 %1521 }
 0x375   :  { %v1853_v35 = vadd.f32 %v1852_v29, %v1851_v26  ;;  %v1471_v28 = vmul.f32 0.2, %v1417_v27  ;;  %vm1455_vm10 = vcmp.ge.f32.partialorder %v1417_v27, 0.0 }
 0x376   :  { %2011 = vmatprep.subr.bf16.mxu1 %v2010_v13 }
 0x377   :  { %v1422_v25 = vadd.f32 %v1853_v35, %v1278_v22  ;;  %v1854_v0 = vpop.f32.mrb[24].mxu0  ;;  %2013 = vmatpush3.bf16.msra.mxu1 %v2010_v13  ;;  %v1487_v37 = vsel %vm1455_vm10, %v1417_v27, %v1471_v28  ;;  %v1537_v29 = vpop.permute.xlu0 %1536 }
 0x378   :  { %v1855_v34 = vpop.f32.mrb[25].mxu0  ;;  %v1532_v22 = vpop.permute.xlu1 %1531 }
 0x379   :  { %vm1456_vm11 = vcmp.ge.f32.partialorder %v1422_v25, 0.0  ;;  %v1472_v6 = vmul.f32 0.2, %v1422_v25  ;;  %v1856_v63 = vadd.f32 %v1855_v34, %v1854_v0 }
 0x37b   :  { %v1427_v51 = vadd.f32 %v1856_v63, %v1283_v36  ;;  %v1857_v48 = vpop.f32.mrb[26].mxu0  ;;  %v1488_v12 = vsel %vm1456_vm11, %v1422_v25, %v1472_v6 }
 0x37c   :  { %v1858_v33 = vpop.f32.mrb[27].mxu0  ;;  %v2014_v23 = vpack.c.bf16 %v1488_v12, %v1487_v37 }
 0x37d   :  { %v1859_v17 = vadd.f32 %v1858_v33, %v1857_v48  ;;  %v1473_v57 = vmul.f32 0.2, %v1427_v51  ;;  %vm1457_vm12 = vcmp.ge.f32.partialorder %v1427_v51, 0.0  ;;  %v1547_v33 = vpop.permute.xlu0 %1546 }
 0x37e   :  { %2015 = vmatprep.subr.bf16.mxu1 %v2014_v23 }
 0x37f   :  { %v1432_v10 = vadd.f32 %v1859_v17, %v1288_v47  ;;  %v1860_v38 = vpop.f32.mrb[28].mxu0  ;;  %2017 = vmatpush3.bf16.msra.mxu1 %v2014_v23  ;;  %v1489_v30 = vsel %vm1457_vm12, %v1427_v51, %v1473_v57  ;;  %v1542_v47 = vpop.permute.xlu1 %1541 }
 0x380   :  { %v1861_v20 = vpop.f32.mrb[29].mxu0 }
 0x381   :  { %vm1458_vm13 = vcmp.ge.f32.partialorder %v1432_v10, 0.0  ;;  %v1474_v1 = vmul.f32 0.2, %v1432_v10  ;;  %v1862_v5 = vadd.f32 %v1861_v20, %v1860_v38 }
 0x383   :  { %v1437_v54 = vadd.f32 %v1862_v5, %v1293_v18  ;;  %v1863_v41 = vpop.f32.mrb[30].mxu0  ;;  %v1490_v21 = vsel %vm1458_vm13, %v1432_v10, %v1474_v1 }
 0x384   :  { %v1864_v24 = vpop.f32.mrb[31].mxu0  ;;  %v2018_v43 = vpack.c.bf16 %v1490_v21, %v1489_v30 }
 0x385   :  { %v1865_v11 = vadd.f32 %v1864_v24, %v1863_v41  ;;  %v1475_v32 = vmul.f32 0.2, %v1437_v54  ;;  %vm1459_vm14 = vcmp.ge.f32.partialorder %v1437_v54, 0.0  ;;  %v1678_v24 = vld [vmem:[%s3383_s7] sm:$0x1]  ;;  %s2137_s7 = scalar_lea.vmem %s1777_s13, 16 }
 0x386   :  { %2019 = vmatprep.subr.bf16.mxu1 %v2018_v43  ;;  %p2138_p0 = scmp.ne.s32.totalorder %s1777_s13, %s2137_s7  ;;  %p2143_p2 = scmp.lt.s32.totalorder %s2141_s14, %s2137_s7 }
 0x387   :  { %v1442_v50 = vadd.f32 %v1865_v11, %v1298_v14  ;;  %2021 = vmatpush3.bf16.msra.mxu1 %v2018_v43  ;;  %v1491_v61 = vsel %vm1459_vm14, %v1437_v54, %v1475_v32  ;;  %v1683_v43 = vpop.permute.xlu1 %1682  ;;  %v3496_v11 = vsub.s32 0, %v2710_v15 }
 0x388   :  { %p2144_p3 = por %p2143_p2, %p2142_p1 }
 0x389   :  { %vm1460_vm15 = vcmp.ge.f32.partialorder %v1442_v50, 0.0  ;;  %v1476_v8 = vmul.f32 0.2, %v1442_v50  ;;  %v1688_v14 = vrot.slane %v1683_v43, %v3496_v11 }
 0x38a   :  { %p2145_p4 = pnand %p2144_p3, %p2138_p0 }
 0x38b   :  { %v1492_v60 = vsel %vm1460_vm15, %v1442_v50, %v1476_v8 }
 0x38c   :  { %v2022_v31 = vpack.c.bf16 %v1492_v60, %v1491_v61 }
 0x38e   :  { %2023 = vmatprep.subr.bf16.mxu1 %v2022_v31 }
 0x38f   :  { %2025 = vmatpush3.bf16.msra.mxu1 %v2022_v31 }
 0x390   :  { %2026 = vmatprep.subr.bf16.mxu1 %v2165_v3 }
 0x392   :  { %1932 = vmatmul.mubr.f32.vlgmr.msra.gmra.mrb[0].mxu1 %v1494_v56 }
 0x393   :  { %1934 = vmatprep.mubr.f32.mxu1 %v1495_v46 }
 0x396   :  { %1935 = vmatmul.mubr.f32.gmra.mrb[2].mxu1 %v1496_v49 }
 0x397   :  { %1937 = vmatprep.mubr.f32.mxu1 %v1497_v58 }
 0x39a   :  { %1938 = vmatmul.mubr.f32.gmra.mrb[4].mxu1 %v1498_v62 }
 0x39b   :  { %1940 = vmatprep.mubr.f32.mxu1 %v1499_v2 }
 0x39e   :  { %1941 = vmatmul.mubr.f32.gmra.mrb[6].mxu1 %v1500_v16 }
 0x39f   :  { %1959 = vmatprep.mubr.msk.f32.mxu1 %vm2166_vm0, %v2167_v7 }
 0x465   :  { %v1933_v42 = vpop.f32.mrb[0].mxu1 }
 0x466   :  { %v1621_v59 = vadd.f32 %v1933_v42, %v1517_v19  ;;  %v1615_v39 = vpop.f32.mrb[1].mxu1 }
 0x467   :  { %v1616_v4 = vadd.f32 %v1615_v39, %v1512_v55 }
 0x468   :  { %vm1655_vm1 = vcmp.ge.f32.partialorder %v1621_v59, 0.0  ;;  %v1663_v53 = vmul.f32 0.2, %v1621_v59 }
 0x469   :  { %vm1654_vm2 = vcmp.ge.f32.partialorder %v1616_v4, 0.0  ;;  %v1662_v45 = vmul.f32 0.2, %v1616_v4  ;;  %v1936_v27 = vpop.f32.mrb[2].mxu1 }
 0x46a   :  { %v1671_v26 = vsel %vm1655_vm1, %v1621_v59, %v1663_v53  ;;  %v1631_v9 = vadd.f32 %v1936_v27, %v1527_v44  ;;  %v1625_v40 = vpop.f32.mrb[3].mxu1 }
 0x46b   :  { %v1670_v13 = vsel %vm1654_vm2, %v1616_v4, %v1662_v45  ;;  %v1626_v35 = vadd.f32 %v1625_v40, %v1522_v52 }
 0x46c   :  { %v2027_v28 = vpack.c.bf16 %v1671_v26, %v1670_v13  ;;  %vm1657_vm3 = vcmp.ge.f32.partialorder %v1631_v9, 0.0  ;;  %v1665_v25 = vmul.f32 0.2, %v1631_v9 }
 0x46d   :  { %vm1656_vm4 = vcmp.ge.f32.partialorder %v1626_v35, 0.0  ;;  %v1664_v0 = vmul.f32 0.2, %v1626_v35  ;;  %v1939_v34 = vpop.f32.mrb[4].mxu1 }
 0x46e   :  { %v1673_v6 = vsel %vm1657_vm3, %v1631_v9, %v1665_v25  ;;  %v1641_v63 = vadd.f32 %v1939_v34, %v1537_v29  ;;  %v1635_v36 = vpop.f32.mrb[5].mxu1  ;;  %2028 = vmatpush3.bf16.msra.mxu1 %v2027_v28 }
 0x46f   :  { %v1672_v51 = vsel %vm1656_vm4, %v1626_v35, %v1664_v0  ;;  %v1636_v48 = vadd.f32 %v1635_v36, %v1532_v22  ;;  %2029 = vmatprep.subr.bf16.mxu1 %v2165_v3 }
 0x470   :  { %v2030_v37 = vpack.c.bf16 %v1673_v6, %v1672_v51  ;;  %vm1659_vm5 = vcmp.ge.f32.partialorder %v1641_v63, 0.0  ;;  %v1667_v12 = vmul.f32 0.2, %v1641_v63 }
 0x471   :  { %vm1658_vm6 = vcmp.ge.f32.partialorder %v1636_v48, 0.0  ;;  %v1666_v23 = vmul.f32 0.2, %v1636_v48  ;;  %v1942_v17 = vpop.f32.mrb[6].mxu1 }
 0x472   :  { %v1675_v57 = vsel %vm1659_vm5, %v1641_v63, %v1667_v12  ;;  %v1651_v10 = vadd.f32 %v1942_v17, %v1547_v33  ;;  %v1645_v38 = vpop.f32.mrb[7].mxu1  ;;  %2031 = vmatpush3.bf16.msra.mxu1 %v2030_v37 }
 0x473   :  { %v1674_v20 = vsel %vm1658_vm6, %v1636_v48, %v1666_v23  ;;  %v1646_v1 = vadd.f32 %v1645_v38, %v1542_v47  ;;  %2032 = vmatprep.subr.bf16.mxu1 %v2165_v3 }
 0x474   :  { %v2033_v5 = vpack.c.bf16 %v1675_v57, %v1674_v20  ;;  %vm1661_vm7 = vcmp.ge.f32.partialorder %v1651_v10, 0.0  ;;  %v1669_v18 = vmul.f32 0.2, %v1651_v10 }
 0x475   :  { %vm1660_vm8 = vcmp.ge.f32.partialorder %v1646_v1, 0.0  ;;  %v1668_v54 = vmul.f32 0.2, %v1646_v1 }
 0x476   :  { %v1677_v41 = vsel %vm1661_vm7, %v1651_v10, %v1669_v18  ;;  %2034 = vmatpush3.bf16.msra.mxu1 %v2033_v5 }
 0x477   :  { %v1676_v30 = vsel %vm1660_vm8, %v1646_v1, %v1668_v54  ;;  %2035 = vmatprep.subr.bf16.mxu1 %v2165_v3 }
 0x478   :  { %v2036_v21 = vpack.c.bf16 %v1677_v41, %v1676_v30 }
 0x47a   :  { %2037 = vmatpush3.bf16.msra.mxu1 %v2036_v21 }
 0x47d   :  { %1960 = vmatmul.mubr.msk.f32.vlgmr.msra.gmra.mrb[8].mxu1 %vm1689_vm9, %v1678_v24 }
 0x550   :  { %v1759_v32 = vpop.f32.mrb[8].mxu1 }
 0x551   :  { %v1760_v50 = vadd.f32 %v1759_v32, %v1688_v14  ;;  %v1961_v8 = vpop.f32.mrb[9].mxu1 }
 0x553   :  { %v1785_v61 = vmul.f32 -1.442695, %v1760_v50 }
 0x555   :  { %2128 = vpow2.f32 %v1785_v61 }
 0x55f   :  { %v2129_v60 = vpop.eup %2128 }
 0x560   :  { %v1766_v31 = vadd.f32 1.0, %v2129_v60 }
 0x562   :  { %2130 = vrcp.f32 %v1766_v31 }
 0x56c   :  { %v2131_v56 = vpop.eup %2130 }
 0x56d   :  { %1769 = vst [vmem:[#allocation3] sm:$0x1] %v2131_v56 }
 0x56e   :  { %2148 = shalt.err (!%p2145_p4)
}
 0x56f   :  { %s2149_s15 = scalar_lea.hbm %s3385_s9, 16 }
 0x570   :  { %p2150_p5 = scmp.ne.s32.totalorder %s3385_s9, %s2149_s15  ;;  %p2153_p6 = scmp.lt.u32.totalorder %s2149_s15, %s3385_s9 }
 0x572   :  { %p2155_p7 = pnand %p2153_p6, %p2150_p5 }
 0x574   :  { %2158 = shalt.err (!%p2155_p7)
}
 0x575   :  { %1779 = dma.vmem_to_hbm [thread:$0]  %s1777_s13, 16, %s3385_s9, [#allocation4]  }
 0x576   :  { %2159 = dma.done.wait [#allocation4], 16  }
 0x577   :  { %2160 = vsyncadd [#allocation4], 4294967280 }
 0x578   :  { %1783 = vsyncpa [#allocation4], 1 }

</bundles_post_ra>
